<compile_context>
chip_gen: v7x
topology: tpu7x:2x2x1
jax: 0.10.0
libtpu: 0.0.40
codegen_flags: <defaults>
</compile_context>

<pallas_src>
import jax
import jax.numpy as jnp
from jax import lax
from jax.experimental import pallas as pl
from jax.experimental.pallas import tpu as pltpu

# ---- model dims (small synthetic config) -----------------------------------
B = 2          # batch
R = 36         # regions (fixed by fc2 = Linear(36*256, 256))
IMG_DIM = 64   # raw region-feature dim (ImageEncoder input)
FEAT = 32      # cfg.n_feature_dim  (ImageEncoder output / fc1 input)
HID = 256      # fc1 / fc2 output dim (fixed in the module)
NCAT = 16      # cfg.n_categories

G = 4          # regions handled per fc2 loop iteration (independent partial accumulators)


def image_attribute_kernel(x_ref, we_ref, be_ref, w1_ref, b1_ref,
                           w2_ref, b2_ref, w3_ref, b3_ref, out_ref, h1_ref):
    """Whole batch in one invocation.

    x_ref : (R*B, IMG_DIM)  region-major rows: row r*B + b = features of (batch b, region r)
    we_ref: (IMG_DIM, FEAT)     be_ref: (1, FEAT)
    w1_ref: (FEAT, HID)         b1_ref: (1, HID)
    w2_ref: (R, HID, HID) bf16  b2_ref: (1, HID)     # fc2 weight, split per region
    w3_ref: (HID, NCAT)         b3_ref: (1, NCAT)
    out_ref: (B, NCAT)
    h1_ref : (R*B, HID) f32 VMEM scratch (staging for fc2 reduction)
    """
    n_regions = w2_ref.shape[0]
    hid = w2_ref.shape[2]
    bsz = out_ref.shape[0]
    assert n_regions % G == 0

    # ---- ImageEncoder: Linear + L2-norm over feature dim (eps = 1e-8) ----
    x = x_ref[...]                                                   # (R*B, IMG_DIM)
    h = jnp.dot(x, we_ref[...], preferred_element_type=jnp.float32) + be_ref[...]
    sumsq = jnp.sum(h * h, axis=-1, keepdims=True)                   # (R*B, 1)
    inv_norm = pl.reciprocal(jnp.sqrt(sumsq) + 1e-8, approx=False)   # EUP, keeps eps semantics
    hn = h * inv_norm                                                # (R*B, FEAT)

    # ---- fc1 ----
    h1 = jnp.dot(hn, w1_ref[...], preferred_element_type=jnp.float32) + b1_ref[...]
    h1_ref[...] = h1                                                 # (R*B, HID) f32 staging

    # ---- fc2: flat (B, R*HID) @ (R*HID, HID), expressed as a reduction over
    #      regions with the batch folded into each dot:
    #        out += h1[:, r, :] @ W2[r]          (B,HID)@(HID,HID)
    #      fori_loop over R//G groups; G independent partial accumulators.
    def body(i, accs):
        base = i * G
        row0 = pl.multiple_of(base * bsz, G * bsz)                   # aligned 8-row block
        blk = h1_ref[pl.ds(row0, G * bsz), :].astype(jnp.bfloat16)   # (G*B, HID) bf16
        new = []
        for g in range(G):
            part = jnp.dot(blk[g * bsz:(g + 1) * bsz, :], w2_ref[base + g],
                           preferred_element_type=jnp.float32)       # (B, HID) f32
            new.append(accs[g] + part)
        return tuple(new)

    init = tuple(jnp.zeros((bsz, hid), jnp.float32) for _ in range(G))
    accs = lax.fori_loop(0, n_regions // G, body, init)
    fc2_out = accs[0] + accs[1] + accs[2] + accs[3] + b2_ref[...]    # (B, HID)

    # ---- fc3 ----
    out = jnp.dot(fc2_out, w3_ref[...], preferred_element_type=jnp.float32) + b3_ref[...]
    out_ref[...] = out.astype(out_ref.dtype)                         # single (B, NCAT) store


def image_attribute_forward(x, we, be, w1, b1, w2r, b2, w3, b3):
    b, r, img_dim = x.shape
    hid = w2r.shape[2]
    ncat = w3.shape[1]
    # Region-major 2-D activation layout: row r*B + b  (done on host/XLA, cheap).
    x_rm = x.transpose(1, 0, 2).reshape(r * b, img_dim)
    out = pl.pallas_call(
        image_attribute_kernel,
        out_shape=jax.ShapeDtypeStruct((b, ncat), jnp.float32),
        scratch_shapes=[pltpu.VMEM((r * b, hid), jnp.float32)],
        compiler_params=pltpu.CompilerParams(vmem_limit_bytes=32 << 20),
    )(x_rm, we, be, w1, b1, w2r, b2, w3, b3)
    return out


def reference_forward(x, enc_w, enc_b, fc1_w, fc1_b, fc2_w, fc2_b, fc3_w, fc3_b):
    """Pure-JAX (f32) mirror of the PyTorch forward (Linear: y = x @ W^T + b)."""
    h = x @ enc_w.T + enc_b                                          # (B, R, FEAT)
    h = h / (jnp.sqrt(jnp.sum(h * h, axis=-1, keepdims=True)) + 1e-8)
    h = h @ fc1_w.T + fc1_b                                          # (B, R, HID)
    h = h.reshape(h.shape[0], -1)                                    # (B, R*HID)
    h = h @ fc2_w.T + fc2_b                                          # (B, HID)
    return h @ fc3_w.T + fc3_b                                       # (B, NCAT)


if __name__ == "__main__":
    key = jax.random.PRNGKey(0)
    keys = jax.random.split(key, 9)

    # Deterministic synthetic parameters (PyTorch Linear layout: (out, in)).
    x = jax.random.normal(keys[0], (B, R, IMG_DIM), dtype=jnp.float32)
    enc_w = 0.05 * jax.random.normal(keys[1], (FEAT, IMG_DIM), dtype=jnp.float32)
    enc_b = 0.05 * jax.random.normal(keys[2], (FEAT,), dtype=jnp.float32)
    fc1_w = 0.05 * jax.random.normal(keys[3], (HID, FEAT), dtype=jnp.float32)
    fc1_b = 0.05 * jax.random.normal(keys[4], (HID,), dtype=jnp.float32)
    fc2_w = 0.02 * jax.random.normal(keys[5], (HID, R * HID), dtype=jnp.float32)
    fc2_b = 0.05 * jax.random.normal(keys[6], (HID,), dtype=jnp.float32)
    fc3_w = 0.05 * jax.random.normal(keys[7], (NCAT, HID), dtype=jnp.float32)
    fc3_b = 0.05 * jax.random.normal(keys[8], (NCAT,), dtype=jnp.float32)

    # Re-arrange parameters for the kernel (transposed weights, 2-D biases,
    # fc2 weight split per region and cast to bf16: (HID, R*HID) -> (R, HID, HID)).
    we = enc_w.T                                          # (IMG_DIM, FEAT) f32
    be = enc_b.reshape(1, FEAT)
    w1 = fc1_w.T                                          # (FEAT, HID) f32
    b1 = fc1_b.reshape(1, HID)
    w2r = fc2_w.T.reshape(R, HID, HID).astype(jnp.bfloat16)   # [r, c, k] = fc2_w[k, r*HID + c]
    b2 = fc2_b.reshape(1, HID)
    w3 = fc3_w.T                                          # (HID, NCAT) f32
    b3 = fc3_b.reshape(1, NCAT)

    out = image_attribute_forward(x, we, be, w1, b1, w2r, b2, w3, b3)
    out = jax.block_until_ready(out)

    ref = reference_forward(x, enc_w, enc_b, fc1_w, fc1_b, fc2_w, fc2_b, fc3_w, fc3_b)
    assert out.shape == (B, NCAT), out.shape
    # Tolerance deliberately relaxed vs the f32 reference: fc2 weights (the
    # dominant HBM traffic) are shipped/consumed as bf16 with f32 accumulation.
    max_err = float(jnp.max(jnp.abs(out - ref)))
    assert jnp.allclose(out, ref, rtol=2e-2, atol=2e-2), "max abs err = %f" % max_err

    print("KERNEL_OK")
</pallas_src>

<mosaic_0001>
module attributes {stable_mosaic.version = 11 : i64} {
  func.func @image_attribute_kernel(%arg0: memref<72x64xf32, #tpu.memory_space<vmem>>, %arg1: memref<64x32xf32, #tpu.memory_space<vmem>>, %arg2: memref<1x32xf32, #tpu.memory_space<vmem>>, %arg3: memref<32x256xf32, #tpu.memory_space<vmem>>, %arg4: memref<1x256xf32, #tpu.memory_space<vmem>>, %arg5: memref<36x256x256xbf16, #tpu.memory_space<vmem>>, %arg6: memref<1x256xf32, #tpu.memory_space<vmem>>, %arg7: memref<256x16xf32, #tpu.memory_space<vmem>>, %arg8: memref<1x16xf32, #tpu.memory_space<vmem>>, %arg9: memref<2x16xf32, #tpu.memory_space<vmem>>, %arg10: memref<72x256xf32, #tpu.memory_space<vmem>>) attributes {dimension_semantics = [], scalar_prefetch = 0 : i64, scratch_operands = 1 : i64, tpu.core_type = #tpu.core_type<tc>} {
    %c0 = arith.constant 0 : index
    %c0_0 = arith.constant 0 : index
    %0 = vector.load %arg0[%c0, %c0_0] : memref<72x64xf32, #tpu.memory_space<vmem>>, vector<72x64xf32>
    %c0_1 = arith.constant 0 : index
    %c0_2 = arith.constant 0 : index
    %1 = vector.load %arg1[%c0_1, %c0_2] : memref<64x32xf32, #tpu.memory_space<vmem>>, vector<64x32xf32>
    %cst = arith.constant dense<0.000000e+00> : vector<72x32xf32>
    %2 = tpu.matmul %0, %1, %cst {dimension_numbers = #tpu.dot_dimension_numbers<[1], [0], [0], [1], [0, 0, 1, 1], [], []>} : vector<72x64xf32>, vector<64x32xf32>, vector<72x32xf32> -> vector<72x32xf32>
    %c0_3 = arith.constant 0 : index
    %c0_4 = arith.constant 0 : index
    %3 = vector.load %arg2[%c0_3, %c0_4] : memref<1x32xf32, #tpu.memory_space<vmem>>, vector<1x32xf32>
    %4 = vector.broadcast %3 : vector<1x32xf32> to vector<72x32xf32>
    %5 = arith.addf %2, %4 : vector<72x32xf32>
    %6 = arith.mulf %5, %5 : vector<72x32xf32>
    %cst_5 = arith.constant dense<0.000000e+00> : vector<72xf32>
    %7 = vector.multi_reduction <add>, %6, %cst_5 [1] : vector<72x32xf32> to vector<72xf32>
    %8 = vector.shape_cast %7 : vector<72xf32> to vector<72x1xf32>
    %9 = math.sqrt %8 : vector<72x1xf32>
    %cst_6 = arith.constant 9.99999993E-9 : f32
    %10 = vector.broadcast %cst_6 : f32 to vector<72x1xf32>
    %11 = arith.addf %9, %10 : vector<72x1xf32>
    %12 = tpu.reciprocal %11 : vector<72x1xf32> -> vector<72x1xf32>
    %13 = vector.broadcast %12 : vector<72x1xf32> to vector<72x32xf32>
    %14 = arith.mulf %5, %13 : vector<72x32xf32>
    %c0_7 = arith.constant 0 : index
    %c0_8 = arith.constant 0 : index
    %15 = vector.load %arg3[%c0_7, %c0_8] : memref<32x256xf32, #tpu.memory_space<vmem>>, vector<32x256xf32>
    %cst_9 = arith.constant dense<0.000000e+00> : vector<72x256xf32>
    %16 = tpu.matmul %14, %15, %cst_9 {dimension_numbers = #tpu.dot_dimension_numbers<[1], [0], [0], [1], [0, 0, 1, 1], [], []>} : vector<72x32xf32>, vector<32x256xf32>, vector<72x256xf32> -> vector<72x256xf32>
    %c0_10 = arith.constant 0 : index
    %c0_11 = arith.constant 0 : index
    %17 = vector.load %arg4[%c0_10, %c0_11] : memref<1x256xf32, #tpu.memory_space<vmem>>, vector<1x256xf32>
    %18 = vector.broadcast %17 : vector<1x256xf32> to vector<72x256xf32>
    %19 = arith.addf %16, %18 : vector<72x256xf32>
    %c0_12 = arith.constant 0 : index
    %c0_13 = arith.constant 0 : index
    %20 = vector.load %arg10[%c0_12, %c0_13] : memref<72x256xf32, #tpu.memory_space<vmem>>, vector<72x256xf32>
    tpu.vector_store %arg10[%c0_12, %c0_13], %19 {strides = array<i32>} : memref<72x256xf32, #tpu.memory_space<vmem>>, vector<72x256xf32>,
    %cst_14 = arith.constant 0.000000e+00 : f32
    %21 = vector.broadcast %cst_14 : f32 to vector<2x256xf32>
    %cst_15 = arith.constant 0.000000e+00 : f32
    %22 = vector.broadcast %cst_15 : f32 to vector<2x256xf32>
    %cst_16 = arith.constant 0.000000e+00 : f32
    %23 = vector.broadcast %cst_16 : f32 to vector<2x256xf32>
    %cst_17 = arith.constant 0.000000e+00 : f32
    %24 = vector.broadcast %cst_17 : f32 to vector<2x256xf32>
    %c0_i32 = arith.constant 0 : i32
    %c9_i32 = arith.constant 9 : i32
    %25 = arith.addi %c0_i32, %c9_i32 : i32
    %c1_i32 = arith.constant 1 : i32
    %26:4 = scf.for %arg11 = %c0_i32 to %25 step %c1_i32 iter_args(%arg12 = %21, %arg13 = %22, %arg14 = %23, %arg15 = %24) -> (vector<2x256xf32>, vector<2x256xf32>, vector<2x256xf32>, vector<2x256xf32>)  : i32 {
      %c4_i32 = arith.constant 4 : i32
      %39 = arith.muli %arg11, %c4_i32 : i32
      %c2_i32 = arith.constant 2 : i32
      %40 = arith.muli %39, %c2_i32 : i32
      %41 = tpu.assume_multiple %40, 8 : i32
      %42 = arith.index_cast %41 : i32 to index
      %c0_28 = arith.constant 0 : index
      %43 = vector.load %arg10[%42, %c0_28] : memref<72x256xf32, #tpu.memory_space<vmem>>, vector<8x256xf32>
      %44 = arith.truncf %43 : vector<8x256xf32> to vector<8x256xbf16>
      %45 = vector.extract_strided_slice %44 {offsets = [0, 0], sizes = [2, 256], strides = [1, 1]} : vector<8x256xbf16> to vector<2x256xbf16>
      %c0_i32_29 = arith.constant 0 : i32
      %46 = arith.addi %39, %c0_i32_29 : i32
      %47 = arith.index_cast %46 : i32 to index
      %c0_30 = arith.constant 0 : index
      %c0_31 = arith.constant 0 : index
      %48 = vector.load %arg5[%47, %c0_30, %c0_31] : memref<36x256x256xbf16, #tpu.memory_space<vmem>>, vector<1x256x256xbf16>
      %49 = vector.shape_cast %48 : vector<1x256x256xbf16> to vector<256x256xbf16>
      %cst_32 = arith.constant dense<0.000000e+00> : vector<2x256xf32>
      %50 = tpu.matmul %45, %49, %cst_32 {dimension_numbers = #tpu.dot_dimension_numbers<[1], [0], [0], [1], [0, 0, 1, 1], [], []>} : vector<2x256xbf16>, vector<256x256xbf16>, vector<2x256xf32> -> vector<2x256xf32>
      %51 = arith.addf %arg12, %50 : vector<2x256xf32>
      %52 = vector.extract_strided_slice %44 {offsets = [2, 0], sizes = [2, 256], strides = [1, 1]} : vector<8x256xbf16> to vector<2x256xbf16>
      %c1_i32_33 = arith.constant 1 : i32
      %53 = arith.addi %39, %c1_i32_33 : i32
      %54 = arith.index_cast %53 : i32 to index
      %c0_34 = arith.constant 0 : index
      %c0_35 = arith.constant 0 : index
      %55 = vector.load %arg5[%54, %c0_34, %c0_35] : memref<36x256x256xbf16, #tpu.memory_space<vmem>>, vector<1x256x256xbf16>
      %56 = vector.shape_cast %55 : vector<1x256x256xbf16> to vector<256x256xbf16>
      %cst_36 = arith.constant dense<0.000000e+00> : vector<2x256xf32>
      %57 = tpu.matmul %52, %56, %cst_36 {dimension_numbers = #tpu.dot_dimension_numbers<[1], [0], [0], [1], [0, 0, 1, 1], [], []>} : vector<2x256xbf16>, vector<256x256xbf16>, vector<2x256xf32> -> vector<2x256xf32>
      %58 = arith.addf %arg13, %57 : vector<2x256xf32>
      %59 = vector.extract_strided_slice %44 {offsets = [4, 0], sizes = [2, 256], strides = [1, 1]} : vector<8x256xbf16> to vector<2x256xbf16>
      %c2_i32_37 = arith.constant 2 : i32
      %60 = arith.addi %39, %c2_i32_37 : i32
      %61 = arith.index_cast %60 : i32 to index
      %c0_38 = arith.constant 0 : index
      %c0_39 = arith.constant 0 : index
      %62 = vector.load %arg5[%61, %c0_38, %c0_39] : memref<36x256x256xbf16, #tpu.memory_space<vmem>>, vector<1x256x256xbf16>
      %63 = vector.shape_cast %62 : vector<1x256x256xbf16> to vector<256x256xbf16>
      %cst_40 = arith.constant dense<0.000000e+00> : vector<2x256xf32>
      %64 = tpu.matmul %59, %63, %cst_40 {dimension_numbers = #tpu.dot_dimension_numbers<[1], [0], [0], [1], [0, 0, 1, 1], [], []>} : vector<2x256xbf16>, vector<256x256xbf16>, vector<2x256xf32> -> vector<2x256xf32>
      %65 = arith.addf %arg14, %64 : vector<2x256xf32>
      %66 = vector.extract_strided_slice %44 {offsets = [6, 0], sizes = [2, 256], strides = [1, 1]} : vector<8x256xbf16> to vector<2x256xbf16>
      %c3_i32 = arith.constant 3 : i32
      %67 = arith.addi %39, %c3_i32 : i32
      %68 = arith.index_cast %67 : i32 to index
      %c0_41 = arith.constant 0 : index
      %c0_42 = arith.constant 0 : index
      %69 = vector.load %arg5[%68, %c0_41, %c0_42] : memref<36x256x256xbf16, #tpu.memory_space<vmem>>, vector<1x256x256xbf16>
      %70 = vector.shape_cast %69 : vector<1x256x256xbf16> to vector<256x256xbf16>
      %cst_43 = arith.constant dense<0.000000e+00> : vector<2x256xf32>
      %71 = tpu.matmul %66, %70, %cst_43 {dimension_numbers = #tpu.dot_dimension_numbers<[1], [0], [0], [1], [0, 0, 1, 1], [], []>} : vector<2x256xbf16>, vector<256x256xbf16>, vector<2x256xf32> -> vector<2x256xf32>
      %72 = arith.addf %arg15, %71 : vector<2x256xf32>
      scf.yield %51, %58, %65, %72 : vector<2x256xf32>, vector<2x256xf32>, vector<2x256xf32>, vector<2x256xf32>
    }
    %c9_i32_18 = arith.constant 9 : i32
    %27 = arith.addf %26#0, %26#1 : vector<2x256xf32>
    %28 = arith.addf %27, %26#2 : vector<2x256xf32>
    %29 = arith.addf %28, %26#3 : vector<2x256xf32>
    %c0_19 = arith.constant 0 : index
    %c0_20 = arith.constant 0 : index
    %30 = vector.load %arg6[%c0_19, %c0_20] : memref<1x256xf32, #tpu.memory_space<vmem>>, vector<1x256xf32>
    %31 = vector.broadcast %30 : vector<1x256xf32> to vector<2x256xf32>
    %32 = arith.addf %29, %31 : vector<2x256xf32>
    %c0_21 = arith.constant 0 : index
    %c0_22 = arith.constant 0 : index
    %33 = vector.load %arg7[%c0_21, %c0_22] : memref<256x16xf32, #tpu.memory_space<vmem>>, vector<256x16xf32>
    %cst_23 = arith.constant dense<0.000000e+00> : vector<2x16xf32>
    %34 = tpu.matmul %32, %33, %cst_23 {dimension_numbers = #tpu.dot_dimension_numbers<[1], [0], [0], [1], [0, 0, 1, 1], [], []>} : vector<2x256xf32>, vector<256x16xf32>, vector<2x16xf32> -> vector<2x16xf32>
    %c0_24 = arith.constant 0 : index
    %c0_25 = arith.constant 0 : index
    %35 = vector.load %arg8[%c0_24, %c0_25] : memref<1x16xf32, #tpu.memory_space<vmem>>, vector<1x16xf32>
    %36 = vector.broadcast %35 : vector<1x16xf32> to vector<2x16xf32>
    %37 = arith.addf %34, %36 : vector<2x16xf32>
    %c0_26 = arith.constant 0 : index
    %c0_27 = arith.constant 0 : index
    %38 = vector.load %arg9[%c0_26, %c0_27] : memref<2x16xf32, #tpu.memory_space<vmem>>, vector<2x16xf32>
    tpu.vector_store %arg9[%c0_26, %c0_27], %37 {strides = array<i32>} : memref<2x16xf32, #tpu.memory_space<vmem>>, vector<2x16xf32>,
    return
  }
}

</mosaic_0001>

<bundles_post_ra>
// kernel: tpu_custom_call.1
= control target key start
LH: loop header
LB: loop body
LE: loop exit
PB: predicated region body
PF: predicated region fallthrough
CT: control target
= control target key end

     0   :  { %14 = vsyncpa [#allocation4], 0  ;;  %s3369_s0 = inlined_call_operand.vmem [shape: f32[72,64], index: 0, kind: input, shape index: {}]   ;;  %s3370_s1 = inlined_call_operand.vmem [shape: f32[64,32], index: 1, kind: input, shape index: {}]   ;;  %s3371_s2 = inlined_call_operand.hbm [shape: f32[1,32], index: 2, kind: input, shape index: {}]   ;;  %s3372_s3 = inlined_call_operand.hbm [shape: f32[32,256], index: 3, kind: input, shape index: {}]   ;;  %s3373_s4 = inlined_call_operand.hbm [shape: f32[1,256], index: 4, kind: input, shape index: {}]   ;;  %s3374_s5 = inlined_call_operand.hbm [shape: bf16[36,256,256], index: 5, kind: input, shape index: {}]   ;;  %s3375_s6 = inlined_call_operand.hbm [shape: f32[1,256], index: 6, kind: input, shape index: {}]   ;;  %s3376_s7 = inlined_call_operand.vmem [shape: f32[256,16], index: 7, kind: input, shape index: {}]   ;;  %s3377_s8 = inlined_call_operand.hbm [shape: f32[1,16], index: 8, kind: input, shape index: {}]   ;;  %s3378_s9 = inlined_call_operand.hbm [shape: f32[2,16], index: 9, kind: output, shape index: {}]  }
   0x1   :  { %15 = vsyncpa [#allocation7], 0 }
   0x2   :  { %16 = vsyncpa [#allocation10], 0 }
   0x3   :  { %17 = vsyncpa [#allocation13], 0 }
   0x4   :  { %18 = vsyncpa [#allocation5], 0  ;;  %s2727_s30 = smov [#allocation6]   ;;  %s2491_s13 = scalar_lea.hbm %s3372_s3, 1024 }
   0x5   :  { %s38_s10 = sshll.u32 %s2727_s30, 4  ;;  %p2492_p0 = scmp.ne.s32.totalorder %s3372_s3, %s2491_s13  ;;  %s39_s10 = int_to_ptr.vmem [resolvable:$true] %s38_s10 }
   0x6   :  { %p2495_p1 = scmp.lt.u32.totalorder %s2491_s13, %s3372_s3 }
   0x8   :  { %p2497_p2 = pnand %p2495_p1, %p2492_p0 }
   0xa   :  { %2500 = shalt.err (!%p2497_p2)
}
   0xb   :  { %s2501_s18 = scalar_lea.vmem %s39_s10, 1024  ;;  %p2506_p4 = scmp.lt.s32.totalorder %s39_s10, %s39_s10 }
   0xc   :  { %p2502_p3 = scmp.ne.s32.totalorder %s39_s10, %s2501_s18  ;;  %p2507_p5 = scmp.lt.s32.totalorder %s2501_s18, %s2501_s18 }
   0xe   :  { %p2508_p6 = por %p2507_p5, %p2506_p4 }
  0x10   :  { %p2509_p7 = pnand %p2508_p6, %p2502_p3 }
  0x12   :  { %2512 = shalt.err (!%p2509_p7)
}
  0x13   :  { %s2728_s19 = smov 256   ;;  %s2729_s20 = smov 16  }
  0x14   :  { %44 = dma.hbm_to_vmem [thread:$0]  %s3372_s3, 1024, %s39_s10, [#allocation7], %s2728_s19, %s2728_s19, %s2729_s20  }
  0x15   :  { %s2730_s23 = smov [#allocation9]   ;;  %s2513_s27 = scalar_lea.hbm %s3374_s5, 147456 }
  0x16   :  { %s60_s24 = sshll.u32 %s2730_s23, 4  ;;  %p2514_p8 = scmp.ne.s32.totalorder %s3374_s5, %s2513_s27  ;;  %s61_s24 = int_to_ptr.vmem [resolvable:$true] %s60_s24 }
  0x17   :  { %p2517_p9 = scmp.lt.u32.totalorder %s2513_s27, %s3374_s5 }
  0x19   :  { %p2519_p10 = pnand %p2517_p9, %p2514_p8 }
  0x1b   :  { %2522 = shalt.err (!%p2519_p10)
}
  0x1c   :  { %s2523_s12 = scalar_lea.vmem %s61_s24, 147456  ;;  %p2528_p12 = scmp.lt.s32.totalorder %s61_s24, %s61_s24 }
  0x1d   :  { %p2524_p11 = scmp.ne.s32.totalorder %s61_s24, %s2523_s12  ;;  %p2529_p13 = scmp.lt.s32.totalorder %s2523_s12, %s2523_s12 }
  0x1f   :  { %p2530_p0 = por %p2529_p13, %p2528_p12 }
  0x21   :  { %p2531_p1 = pnand %p2530_p0, %p2524_p11 }
  0x23   :  { %2534 = shalt.err (!%p2531_p1)
}
  0x24   :  { %s2731_s3 = smov 128   ;;  %s2732_s10 = smov 8  }
  0x25   :  { %66 = dma.hbm_to_vmem [thread:$0]  %s3374_s5, 147456, %s61_s24, [#allocation10], %s2731_s3, %s2731_s3, %s2732_s10  }
  0x26   :  { %s2733_s15 = smov [#allocation3]   ;;  %s2734_s17 = smov [#allocation8]  }
  0x27   :  { %s29_s16 = sshll.u32 %s2733_s15, 4  ;;  %s51_s18 = sshll.u32 %s2734_s17, 4  ;;  %s30_s16 = int_to_ptr.vmem [resolvable:$true] %s29_s16  ;;  %s52_s18 = int_to_ptr.vmem [resolvable:$true] %s51_s18 }
  0x28   :  { %s2535_s21 = scalar_lea.hbm %s3371_s2, 16 }
  0x29   :  { %p2536_p2 = scmp.ne.s32.totalorder %s3371_s2, %s2535_s21  ;;  %p2539_p3 = scmp.lt.u32.totalorder %s2535_s21, %s3371_s2 }
  0x2b   :  { %p2541_p4 = pnand %p2539_p3, %p2536_p2 }
  0x2d   :  { %2544 = shalt.err (!%p2541_p4)
}
  0x2e   :  { %s2545_s5 = scalar_lea.vmem %s30_s16, 16  ;;  %s2549_s24 = scalar_lea.vmem %s30_s16, 32 }
  0x2f   :  { %p2546_p5 = scmp.ne.s32.totalorder %s30_s16, %s2545_s5  ;;  %p2550_p6 = scmp.lt.s32.totalorder %s30_s16, %s30_s16 }
  0x30   :  { %p2551_p7 = scmp.lt.s32.totalorder %s2549_s24, %s2545_s5 }
  0x32   :  { %p2552_p8 = por %p2551_p7, %p2550_p6 }
  0x34   :  { %p2553_p9 = pnand %p2552_p8, %p2546_p5 }
  0x36   :  { %2556 = shalt.err (!%p2553_p9)
}
  0x37   :  { %32 = dma.hbm_to_vmem [thread:$0]  %s3371_s2, 16, %s30_s16, [#allocation4]  }
  0x38   :  { %s2557_s11 = scalar_lea.hbm %s3373_s4, 32 }
  0x39   :  { %p2558_p10 = scmp.ne.s32.totalorder %s3373_s4, %s2557_s11  ;;  %p2561_p11 = scmp.lt.u32.totalorder %s2557_s11, %s3373_s4 }
  0x3b   :  { %p2563_p12 = pnand %p2561_p11, %p2558_p10 }
  0x3d   :  { %2566 = shalt.err (!%p2563_p12)
}
  0x3e   :  { %s2567_s14 = scalar_lea.vmem %s52_s18, 32  ;;  %p2572_p0 = scmp.lt.s32.totalorder %s52_s18, %s52_s18 }
  0x3f   :  { %p2568_p13 = scmp.ne.s32.totalorder %s52_s18, %s2567_s14  ;;  %p2573_p1 = scmp.lt.s32.totalorder %s2567_s14, %s2567_s14 }
  0x41   :  { %p2574_p2 = por %p2573_p1, %p2572_p0 }
  0x43   :  { %p2575_p3 = pnand %p2574_p2, %p2568_p13 }
  0x45   :  { %2578 = shalt.err (!%p2575_p3)
}
  0x46   :  { %54 = dma.hbm_to_vmem [thread:$0]  %s3373_s4, 32, %s52_s18, [#allocation7]  }
  0x47   :  { %s2735_s16 = smov [#allocation11]   ;;  %s2736_s19 = smov [#allocation12]  }
  0x48   :  { %s73_s17 = sshll.u32 %s2735_s16, 4  ;;  %s85_s20 = sshll.u32 %s2736_s19, 4  ;;  %s74_s17 = int_to_ptr.vmem [resolvable:$true] %s73_s17  ;;  %s86_s20 = int_to_ptr.vmem [resolvable:$true] %s85_s20 }
  0x49   :  { %s2579_s23 = scalar_lea.hbm %s3375_s6, 32 }
  0x4a   :  { %p2580_p4 = scmp.ne.s32.totalorder %s3375_s6, %s2579_s23  ;;  %p2583_p5 = scmp.lt.u32.totalorder %s2579_s23, %s3375_s6 }
  0x4c   :  { %p2585_p6 = pnand %p2583_p5, %p2580_p4 }
  0x4e   :  { %2588 = shalt.err (!%p2585_p6)
}
  0x4f   :  { %s2589_s4 = scalar_lea.vmem %s74_s17, 32  ;;  %p2594_p8 = scmp.lt.s32.totalorder %s74_s17, %s74_s17 }
  0x50   :  { %p2590_p7 = scmp.ne.s32.totalorder %s74_s17, %s2589_s4  ;;  %p2595_p9 = scmp.lt.s32.totalorder %s2589_s4, %s2589_s4 }
  0x52   :  { %p2596_p10 = por %p2595_p9, %p2594_p8 }
  0x54   :  { %p2597_p11 = pnand %p2596_p10, %p2590_p7 }
  0x56   :  { %2600 = shalt.err (!%p2597_p11)
}
  0x57   :  { %76 = dma.hbm_to_vmem [thread:$0]  %s3375_s6, 32, %s74_s17, [#allocation10]  }
  0x58   :  { %s2601_s30 = scalar_lea.hbm %s3377_s8, 16 }
  0x59   :  { %p2602_p12 = scmp.ne.s32.totalorder %s3377_s8, %s2601_s30  ;;  %p2605_p13 = scmp.lt.u32.totalorder %s2601_s30, %s3377_s8 }
  0x5b   :  { %p2607_p0 = pnand %p2605_p13, %p2602_p12 }
  0x5d   :  { %2610 = shalt.err (!%p2607_p0)
}
  0x5e   :  { %s2611_s13 = scalar_lea.vmem %s86_s20, 16  ;;  %s2615_s14 = scalar_lea.vmem %s86_s20, 32 }
  0x5f   :  { %p2612_p1 = scmp.ne.s32.totalorder %s86_s20, %s2611_s13  ;;  %p2616_p2 = scmp.lt.s32.totalorder %s86_s20, %s86_s20 }
  0x60   :  { %p2617_p3 = scmp.lt.s32.totalorder %s2615_s14, %s2611_s13 }
  0x62   :  { %p2618_p4 = por %p2617_p3, %p2616_p2 }
  0x64   :  { %p2619_p5 = pnand %p2618_p4, %p2612_p1 }
  0x66   :  { %2622 = shalt.err (!%p2619_p5)
}
  0x67   :  { %88 = dma.hbm_to_vmem [thread:$0]  %s3377_s8, 16, %s86_s20, [#allocation13]  }
  0x68   :  { %2681 = dma.done.wait [#allocation4], 16  }
  0x69   :  { %2682 = vsyncadd [#allocation4], 4294967280 }
  0x6a   :  { %2683 = dma.done.wait [#allocation7], 1056  }
  0x6b   :  { %2684 = vsyncadd [#allocation7], 4294966240 }
  0x6c   :  { %2685 = dma.done.wait [#allocation10], 147488  }
  0x6d   :  { %2686 = vsyncadd [#allocation10], 4294819808 }
  0x6e   :  { %2687 = dma.done.wait [#allocation13], 16  }
  0x6f   :  { %2688 = vsyncadd [#allocation13], 4294967280  ;;  %v2737_v0 = vmov 0.0|0.0   ;;  %vm2738_vm0 = vmmov 0   ;;  %v2739_v1 = vmov 0.0   ;;  %v116_v2 = vld [vmem:[%s3370_s1] sm:$0xff] }
  0x70   :  { %2125 = vmatprep.subr.bf16.mxu0 %v2737_v0  ;;  %2098 = vmatprep.mubr.msk.f32.mxu0 %vm2738_vm0, %v2739_v1  ;;  %v117_v3 = vld [vmem:[%s3370_s1 + $0x8] sm:$0xff]  ;;  %v118_v4 = vld [vmem:[%s3370_s1 + $0x10] sm:$0xff]  ;;  %v119_v6 = vld [vmem:[%s3370_s1 + $0x18] sm:$0xff]  ;;  %vm131_vm1 = vcmask 523264   ;;  %vm278_vm2 = vcmask 261120  }
  0x71   :  { %507 = vmatprep.mubr.f32.mxu1 %v2739_v1  ;;  %v2126_v5 = vpack.c.bf16 %v117_v3, %v116_v2  ;;  %v2129_v7 = vpack.c.bf16 %v119_v6, %v118_v4  ;;  %v120_v8 = vld [vmem:[%s3370_s1 + $0x20] sm:$0xff]  ;;  %v121_v9 = vld [vmem:[%s3370_s1 + $0x28] sm:$0xff]  ;;  %v122_v11 = vld [vmem:[%s3370_s1 + $0x30] sm:$0xff] }
  0x72   :  { %v2132_v10 = vpack.c.bf16 %v121_v9, %v120_v8  ;;  %v123_v12 = vld [vmem:[%s3370_s1 + $0x38] sm:$0xff]  ;;  %v107_v14 = vld [vmem:[%s3369_s0] sm:$0xff]  ;;  %v108_v15 = vld [vmem:[%s3369_s0 + $0x8] sm:$0xff] }
  0x73   :  { %2127 = vmatpush3.bf16.msra.mxu0 %v2126_v5  ;;  %v2135_v13 = vpack.c.bf16 %v123_v12, %v122_v11  ;;  %v109_v16 = vld [vmem:[%s3369_s0 + $0x10] sm:$0xff]  ;;  %v110_v17 = vld [vmem:[%s3369_s0 + $0x18] sm:$0xff]  ;;  %v111_v18 = vld [vmem:[%s3369_s0 + $0x20] sm:$0xff] }
  0x74   :  { %2128 = vmatprep.subr.bf16.mxu0 %v2737_v0  ;;  %v112_v19 = vld [vmem:[%s3369_s0 + $0x28] sm:$0xff]  ;;  %v113_v20 = vld [vmem:[%s3369_s0 + $0x30] sm:$0xff]  ;;  %v114_v21 = vld [vmem:[%s3369_s0 + $0x38] sm:$0xff] }
  0x75   :  { %v115_v22 = vld [vmem:[%s3369_s0 + $0x40] sm:$0xff]  ;;  %v1768_v23 = vld [vmem:[#allocation3] ss:$0 sm:$0xff]  ;;  %v396_v9 = vld [vmem:[#allocation6] sm:$0xff]  ;;  %s3037_s0 = smov 0  }
  0x76   :  { %v397_v6 = vld [vmem:[#allocation6 + $0x8] sm:$0xff] }
  0x77   :  { %2130 = vmatpush3.bf16.msra.mxu0 %v2129_v7  ;;  %v399_v7 = vld [vmem:[#allocation6 + $0x18] sm:$0xff]  ;;  %v401_v12 = vld [vmem:[#allocation6 + $0x28] sm:$0xff] }
  0x78   :  { %2131 = vmatprep.subr.bf16.mxu0 %v2737_v0  ;;  %v2137_v8 = vpack.c.bf16 %v399_v7, %v397_v6 }
  0x7a   :  { %2138 = vmatprep.subr.bf16.mxu1 %v2137_v8 }
  0x7b   :  { %2133 = vmatpush3.bf16.msra.mxu0 %v2132_v10  ;;  %v398_v10 = vld [vmem:[#allocation6 + $0x10] sm:$0xff] }
  0x7c   :  { %2134 = vmatprep.subr.bf16.mxu0 %v2737_v0  ;;  %v2139_v11 = vpack.c.bf16 %v398_v10, %v396_v9 }
  0x7e   :  { %2140 = vmatpush1.bf16.msra.mxu1 %v2139_v11 }
  0x7f   :  { %2136 = vmatpush3.bf16.msra.mxu0 %v2135_v13  ;;  %v403_v13 = vld [vmem:[#allocation6 + $0x38] sm:$0xff] }
  0x82   :  { %2099 = vmatmul.mubr.msk.f32.vlgmr.msra.gmra.mrb[0].mxu0 %vm131_vm1, %v107_v14  ;;  %v2141_v14 = vpack.c.bf16 %v403_v13, %v401_v12 }
  0x83   :  { %2101 = vmatprep.mubr.msk.f32.mxu0 %vm2738_vm0, %v2739_v1 }
  0x84   :  { %2142 = vmatprep.subr.bf16.mxu1 %v2141_v14 }
  0x86   :  { %2102 = vmatmul.mubr.msk.f32.gmra.mrb[2].mxu0 %vm131_vm1, %v108_v15  ;;  %v400_v15 = vld [vmem:[#allocation6 + $0x20] sm:$0xff] }
  0x87   :  { %2104 = vmatprep.mubr.msk.f32.mxu0 %vm2738_vm0, %v2739_v1 }
  0x8a   :  { %2105 = vmatmul.mubr.msk.f32.gmra.mrb[4].mxu0 %vm131_vm1, %v109_v16  ;;  %v402_v16 = vld [vmem:[#allocation6 + $0x30] sm:$0xff] }
  0x8b   :  { %2107 = vmatprep.mubr.msk.f32.mxu0 %vm2738_vm0, %v2739_v1 }
  0x8e   :  { %2108 = vmatmul.mubr.msk.f32.gmra.mrb[6].mxu0 %vm131_vm1, %v110_v17  ;;  %v2143_v17 = vpack.c.bf16 %v402_v16, %v400_v15 }
  0x8f   :  { %2110 = vmatprep.mubr.msk.f32.mxu0 %vm2738_vm0, %v2739_v1 }
  0x90   :  { %2144 = vmatpush1.bf16.msra.mxu1 %v2143_v17 }
  0x92   :  { %2111 = vmatmul.mubr.msk.f32.gmra.mrb[8].mxu0 %vm131_vm1, %v111_v18 }
  0x93   :  { %2113 = vmatprep.mubr.msk.f32.mxu0 %vm2738_vm0, %v2739_v1 }
  0x96   :  { %2114 = vmatmul.mubr.msk.f32.gmra.mrb[10].mxu0 %vm131_vm1, %v112_v19 }
  0x97   :  { %2116 = vmatprep.mubr.msk.f32.mxu0 %vm2738_vm0, %v2739_v1 }
  0x9a   :  { %2117 = vmatmul.mubr.msk.f32.gmra.mrb[12].mxu0 %vm131_vm1, %v113_v20 }
  0x9b   :  { %2119 = vmatprep.mubr.msk.f32.mxu0 %vm2738_vm0, %v2739_v1 }
  0x9e   :  { %2120 = vmatmul.mubr.msk.f32.gmra.mrb[14].mxu0 %vm131_vm1, %v114_v21 }
  0x9f   :  { %2122 = vmatprep.mubr.msk.f32.mxu0 %vm2738_vm0, %v2739_v1 }
  0xa2   :  { %2123 = vmatmul.mubr.msk.f32.gmra.mrb[16].mxu0 %vm131_vm1, %v115_v22 }
 0x155   :  { %v225_v24 = vpop.f32.mrb[0].mxu0 }
 0x156   :  { %v2942_v25 = vadd.f32 %v1768_v23, %v225_v24  ;;  %v2100_v26 = vpop.f32.mrb[1].mxu0 }
 0x158   :  { %v269_v27 = vmul.f32 %v2942_v25, %v2942_v25 }
 0x159   :  { %v230_v28 = vpop.f32.mrb[2].mxu0 }
 0x15a   :  { %v2946_v29 = vadd.f32 %v1768_v23, %v230_v28  ;;  %v2103_v30 = vpop.f32.mrb[3].mxu0  ;;  %v279_v31 = vsel %vm278_vm2, %v269_v27, 0.0 }
 0x15b   :  { %280 = vadd.xlane.f32.xlu0 %v279_v31 }
 0x15c   :  { %v270_v32 = vmul.f32 %v2946_v29, %v2946_v29 }
 0x15d   :  { %v235_v33 = vpop.f32.mrb[4].mxu0 }
 0x15e   :  { %v2951_v34 = vadd.f32 %v1768_v23, %v235_v33  ;;  %v2106_v35 = vpop.f32.mrb[5].mxu0  ;;  %v282_v36 = vsel %vm278_vm2, %v270_v32, 0.0 }
 0x15f   :  { %283 = vadd.xlane.f32.xlu0 %v282_v36 }
 0x160   :  { %v271_v37 = vmul.f32 %v2951_v34, %v2951_v34 }
 0x161   :  { %v240_v38 = vpop.f32.mrb[6].mxu0 }
 0x162   :  { %v2956_v39 = vadd.f32 %v1768_v23, %v240_v38  ;;  %v2109_v40 = vpop.f32.mrb[7].mxu0  ;;  %v285_v41 = vsel %vm278_vm2, %v271_v37, 0.0 }
 0x163   :  { %286 = vadd.xlane.f32.xlu1 %v285_v41 }
 0x164   :  { %v272_v42 = vmul.f32 %v2956_v39, %v2956_v39 }
 0x165   :  { %v245_v43 = vpop.f32.mrb[8].mxu0 }
 0x166   :  { %v2961_v44 = vadd.f32 %v1768_v23, %v245_v43  ;;  %v2112_v45 = vpop.f32.mrb[9].mxu0  ;;  %v288_v46 = vsel %vm278_vm2, %v272_v42, 0.0 }
 0x167   :  { %289 = vadd.xlane.f32.xlu1 %v288_v46 }
 0x168   :  { %v273_v47 = vmul.f32 %v2961_v44, %v2961_v44 }
 0x169   :  { %v250_v48 = vpop.f32.mrb[10].mxu0 }
 0x16a   :  { %v2966_v49 = vadd.f32 %v1768_v23, %v250_v48  ;;  %v2115_v50 = vpop.f32.mrb[11].mxu0  ;;  %v291_v51 = vsel %vm278_vm2, %v273_v47, 0.0 }
 0x16b   :  { %292 = vadd.xlane.f32.xlu0 %v291_v51 }
 0x16c   :  { %v274_v52 = vmul.f32 %v2966_v49, %v2966_v49 }
 0x16d   :  { %v255_v53 = vpop.f32.mrb[12].mxu0 }
 0x16e   :  { %v2971_v54 = vadd.f32 %v1768_v23, %v255_v53  ;;  %v2118_v55 = vpop.f32.mrb[13].mxu0  ;;  %v294_v56 = vsel %vm278_vm2, %v274_v52, 0.0 }
 0x16f   :  { %295 = vadd.xlane.f32.xlu1 %v294_v56 }
 0x170   :  { %v275_v57 = vmul.f32 %v2971_v54, %v2971_v54 }
 0x171   :  { %v260_v58 = vpop.f32.mrb[14].mxu0 }
 0x172   :  { %v2976_v59 = vadd.f32 %v1768_v23, %v260_v58  ;;  %v2121_v60 = vpop.f32.mrb[15].mxu0  ;;  %v297_v61 = vsel %vm278_vm2, %v275_v57, 0.0 }
 0x173   :  { %298 = vadd.xlane.f32.xlu0 %v297_v61 }
 0x174   :  { %v276_v62 = vmul.f32 %v2976_v59, %v2976_v59 }
 0x175   :  { %v265_v63 = vpop.f32.mrb[16].mxu0 }
 0x176   :  { %v2981_v0 = vadd.f32 %v1768_v23, %v265_v63  ;;  %v2124_v2 = vpop.f32.mrb[17].mxu0  ;;  %v300_v3 = vsel %vm278_vm2, %v276_v62, 0.0 }
 0x177   :  { %301 = vadd.xlane.f32.xlu1 %v300_v3 }
 0x178   :  { %v277_v4 = vmul.f32 %v2981_v0, %v2981_v0 }
 0x17a   :  { %v303_v5 = vsel %vm278_vm2, %v277_v4, 0.0 }
 0x17b   :  { %304 = vadd.xlane.f32.xlu0 %v303_v5 }
 0x1e8   :  { %v281_v18 = vpop.xlane.xlu0 %280 }
 0x1e9   :  { %2263 = vrsqrt.f32 %v281_v18  ;;  %vm308_vm3 = vcmp.eq.f32.partialorder %v281_v18, inf  ;;  %v311_v24 = vand.u32 2147483648, %v281_v18  ;;  %vm310_vm4 = vcmp.eq.f32.partialorder %v281_v18, 0.0 }
 0x1ec   :  { %v284_v19 = vpop.xlane.xlu0 %283 }
 0x1ed   :  { %2265 = vrsqrt.f32 %v284_v19  ;;  %vm315_vm5 = vcmp.eq.f32.partialorder %v284_v19, inf  ;;  %v318_v33 = vand.u32 2147483648, %v284_v19  ;;  %vm317_vm6 = vcmp.eq.f32.partialorder %v284_v19, 0.0 }
 0x1f0   :  { %v287_v20 = vpop.xlane.xlu1 %286 }
 0x1f1   :  { %2267 = vrsqrt.f32 %v287_v20  ;;  %vm322_vm7 = vcmp.eq.f32.partialorder %v287_v20, inf  ;;  %v325_v42 = vand.u32 2147483648, %v287_v20  ;;  %vm324_vm8 = vcmp.eq.f32.partialorder %v287_v20, 0.0 }
 0x1f3   :  { %v2264_v21 = vpop.eup %2263 }
 0x1f4   :  { %v307_v22 = vmul.f32 %v2264_v21, %v281_v18  ;;  %v290_v23 = vpop.xlane.xlu1 %289 }
 0x1f5   :  { %2269 = vrsqrt.f32 %v290_v23  ;;  %vm329_vm9 = vcmp.eq.f32.partialorder %v290_v23, inf  ;;  %v332_v51 = vand.u32 2147483648, %v290_v23  ;;  %vm331_vm10 = vcmp.eq.f32.partialorder %v290_v23, 0.0 }
 0x1f6   :  { %v309_v26 = vsel %vm308_vm3, %v281_v18, %v307_v22 }
 0x1f7   :  { %v2266_v27 = vpop.eup %2265  ;;  %v312_v28 = vsel %vm310_vm4, %v311_v24, %v309_v26 }
 0x1f8   :  { %v369_v30 = vadd.f32 1e-08, %v312_v28  ;;  %v314_v31 = vmul.f32 %v2266_v27, %v284_v19  ;;  %v293_v32 = vpop.xlane.xlu0 %292 }
 0x1f9   :  { %2271 = vrsqrt.f32 %v293_v32  ;;  %vm336_vm11 = vcmp.eq.f32.partialorder %v293_v32, inf  ;;  %v339_v61 = vand.u32 2147483648, %v293_v32  ;;  %vm338_vm12 = vcmp.eq.f32.partialorder %v293_v32, 0.0 }
 0x1fa   :  { %2273 = vrcp.f32 %v369_v30  ;;  %v316_v35 = vsel %vm315_vm5, %v284_v19, %v314_v31 }
 0x1fb   :  { %v2268_v36 = vpop.eup %2267  ;;  %v319_v37 = vsel %vm317_vm6, %v318_v33, %v316_v35 }
 0x1fc   :  { %v370_v38 = vadd.f32 1e-08, %v319_v37  ;;  %v321_v40 = vmul.f32 %v2268_v36, %v287_v20  ;;  %v296_v41 = vpop.xlane.xlu1 %295 }
 0x1fd   :  { %2275 = vrsqrt.f32 %v296_v41  ;;  %vm343_vm13 = vcmp.eq.f32.partialorder %v296_v41, inf  ;;  %v346_v8 = vand.u32 2147483648, %v296_v41  ;;  %vm345_vm14 = vcmp.eq.f32.partialorder %v296_v41, 0.0 }
 0x1fe   :  { %2277 = vrcp.f32 %v370_v38  ;;  %v323_v43 = vsel %vm322_vm7, %v287_v20, %v321_v40 }
 0x1ff   :  { %v2270_v45 = vpop.eup %2269  ;;  %v326_v46 = vsel %vm324_vm8, %v325_v42, %v323_v43  ;;  %v406_v43 = vlaneseq }
 0x200   :  { %v371_v47 = vadd.f32 1e-08, %v326_v46  ;;  %v328_v48 = vmul.f32 %v2270_v45, %v290_v23  ;;  %v299_v50 = vpop.xlane.xlu0 %298  ;;  %v404_v46 = vld [vmem:[#allocation8] sm:$0x3] }
 0x201   :  { %2279 = vrsqrt.f32 %v299_v50  ;;  %vm350_vm15 = vcmp.eq.f32.partialorder %v299_v50, inf  ;;  %v353_v15 = vand.u32 2147483648, %v299_v50  ;;  %vm352_vm0 = vcmp.eq.f32.partialorder %v299_v50, 0.0 }
 0x202   :  { %2281 = vrcp.f32 %v371_v47  ;;  %v330_v52 = vsel %vm329_vm9, %v290_v23, %v328_v48  ;;  %v3013_v45 = vshrl.u32 %v406_v43, 7 }
 0x203   :  { %v2272_v53 = vpop.eup %2271  ;;  %v333_v55 = vsel %vm331_vm10, %v332_v51, %v330_v52 }
 0x204   :  { %v2274_v56 = vpop.eup %2273  ;;  %v372_v57 = vadd.f32 1e-08, %v333_v55  ;;  %v335_v58 = vmul.f32 %v2272_v53, %v293_v32  ;;  %v302_v60 = vpop.xlane.xlu1 %301  ;;  %v412_v47 = vsub.s32 1, %v3013_v45 }
 0x205   :  { %2283 = vrsqrt.f32 %v302_v60  ;;  %v387_v63 = vmul.f32 %v2274_v56, %v2942_v25  ;;  %vm357_vm1 = vcmp.eq.f32.partialorder %v302_v60, inf  ;;  %v360_v22 = vand.u32 2147483648, %v302_v60 }
 0x206   :  { %2285 = vrcp.f32 %v372_v57  ;;  %v337_v62 = vsel %vm336_vm11, %v293_v32, %v335_v58  ;;  %vm359_vm3 = vcmp.eq.f32.partialorder %v302_v60, 0.0  ;;  %v413_v48 = vrot.slane %v404_v46, %v412_v47 }
 0x207   :  { %v2276_v2 = vpop.eup %2275  ;;  %v340_v3 = vsel %vm338_vm12, %v339_v61, %v337_v62  ;;  %1778 = vmatmul.mubr.msk.f32.vlgmr.msra.gmra.mrb[0].mxu1 %vm278_vm2, %v387_v63 }
 0x208   :  { %v2278_v4 = vpop.eup %2277  ;;  %v373_v5 = vadd.f32 1e-08, %v340_v3  ;;  %v342_v6 = vmul.f32 %v2276_v2, %v296_v41  ;;  %v305_v7 = vpop.xlane.xlu0 %304  ;;  %513 = vmatprep.mubr.f32.mxu1 %v2739_v1 }
 0x209   :  { %2287 = vrsqrt.f32 %v305_v7  ;;  %v388_v10 = vmul.f32 %v2278_v4, %v2946_v29  ;;  %vm364_vm4 = vcmp.eq.f32.partialorder %v305_v7, inf  ;;  %v367_v31 = vand.u32 2147483648, %v305_v7 }
 0x20a   :  { %2289 = vrcp.f32 %v373_v5  ;;  %v344_v9 = vsel %vm343_vm13, %v296_v41, %v342_v6  ;;  %vm366_vm5 = vcmp.eq.f32.partialorder %v305_v7, 0.0 }
 0x20b   :  { %v2280_v11 = vpop.eup %2279  ;;  %v347_v25 = vsel %vm345_vm14, %v346_v8, %v344_v9  ;;  %1779 = vmatmul.mubr.msk.f32.gmra.mrb[2].mxu1 %vm278_vm2, %v388_v10 }
 0x20c   :  { %v2282_v12 = vpop.eup %2281  ;;  %v374_v13 = vadd.f32 1e-08, %v347_v25  ;;  %v349_v14 = vmul.f32 %v2280_v11, %v299_v50  ;;  %519 = vmatprep.mubr.f32.mxu1 %v2739_v1 }
 0x20d   :  { %v389_v16 = vmul.f32 %v2282_v12, %v2951_v34 }
 0x20e   :  { %2291 = vrcp.f32 %v374_v13  ;;  %v351_v17 = vsel %vm350_vm15, %v299_v50, %v349_v14 }
 0x20f   :  { %v2284_v18 = vpop.eup %2283  ;;  %v354_v19 = vsel %vm352_vm0, %v353_v15, %v351_v17  ;;  %1780 = vmatmul.mubr.msk.f32.gmra.mrb[4].mxu1 %vm278_vm2, %v389_v16 }
 0x210   :  { %v2286_v20 = vpop.eup %2285  ;;  %v375_v29 = vadd.f32 1e-08, %v354_v19  ;;  %v356_v21 = vmul.f32 %v2284_v18, %v302_v60  ;;  %525 = vmatprep.mubr.f32.mxu1 %v2739_v1 }
 0x211   :  { %v390_v23 = vmul.f32 %v2286_v20, %v2956_v39 }
 0x212   :  { %2293 = vrcp.f32 %v375_v29  ;;  %v358_v24 = vsel %vm357_vm1, %v302_v60, %v356_v21 }
 0x213   :  { %v2288_v34 = vpop.eup %2287  ;;  %v361_v26 = vsel %vm359_vm3, %v360_v22, %v358_v24  ;;  %1781 = vmatmul.mubr.msk.f32.gmra.mrb[6].mxu1 %vm278_vm2, %v390_v23  ;;  %v3021_v22 = vmov 0.0   ;;  %v3023_v23 = vmov 0.0   ;;  %v3025_v24 = vmov 0.0  }
 0x214   :  { %v2290_v27 = vpop.eup %2289  ;;  %v376_v28 = vadd.f32 1e-08, %v361_v26  ;;  %v363_v30 = vmul.f32 %v2288_v34, %v305_v7  ;;  %531 = vmatprep.mubr.f32.mxu1 %v2739_v1  ;;  %v3027_v34 = vmov 0.0   ;;  %v3029_v26 = vmov 0.0  }
 0x215   :  { %v391_v32 = vmul.f32 %v2290_v27, %v2961_v44  ;;  %v3031_v27 = vmov 0.0  }
 0x216   :  { %2295 = vrcp.f32 %v376_v28  ;;  %v365_v33 = vsel %vm364_vm4, %v305_v7, %v363_v30  ;;  %v3033_v28 = vmov 0.0   ;;  %v3035_v30 = vmov 0.0  }
 0x217   :  { %v368_v39 = vsel %vm366_vm5, %v367_v31, %v365_v33  ;;  %1782 = vmatmul.mubr.msk.f32.gmra.mrb[8].mxu1 %vm278_vm2, %v391_v32 }
 0x218   :  { %v2292_v35 = vpop.eup %2291  ;;  %v377_v36 = vadd.f32 1e-08, %v368_v39  ;;  %537 = vmatprep.mubr.f32.mxu1 %v2739_v1 }
 0x219   :  { %v392_v37 = vmul.f32 %v2292_v35, %v2966_v49 }
 0x21a   :  { %2297 = vrcp.f32 %v377_v36 }
 0x21b   :  { %1783 = vmatmul.mubr.msk.f32.gmra.mrb[10].mxu1 %vm278_vm2, %v392_v37 }
 0x21c   :  { %v2294_v38 = vpop.eup %2293  ;;  %543 = vmatprep.mubr.f32.mxu1 %v2739_v1 }
 0x21d   :  { %v393_v44 = vmul.f32 %v2294_v38, %v2971_v54  ;;  %v408_v54 = vsub.s32 0, %v3013_v45 }
 0x21f   :  { %1784 = vmatmul.mubr.msk.f32.gmra.mrb[12].mxu1 %vm278_vm2, %v393_v44 }
 0x220   :  { %v2296_v40 = vpop.eup %2295  ;;  %549 = vmatprep.mubr.f32.mxu1 %v2739_v1 }
 0x221   :  { %v394_v41 = vmul.f32 %v2296_v40, %v2976_v59  ;;  %v409_v59 = vrot.slane %v404_v46, %v408_v54 }
 0x223   :  { %1785 = vmatmul.mubr.msk.f32.gmra.mrb[14].mxu1 %vm278_vm2, %v394_v41 }
 0x224   :  { %v2298_v42 = vpop.eup %2297  ;;  %555 = vmatprep.mubr.f32.mxu1 %v2739_v1 }
 0x225   :  { %v395_v49 = vmul.f32 %v2298_v42, %v2981_v0 }
 0x227   :  { %1786 = vmatmul.mubr.msk.f32.gmra.mrb[16].mxu1 %vm278_vm2, %v395_v49 }
 0x2da   :  { %v509_v50 = vpop.f32.mrb[0].mxu1 }
 0x2db   :  { %v510_v1 = vadd.f32 %v509_v50, %v409_v59  ;;  %v511_v51 = vpop.f32.mrb[1].mxu1 }
 0x2dc   :  { %v512_v0 = vadd.f32 %v511_v51, %v413_v48 }
 0x2dd   :  { %562 = vst [vmem:[#allocation2] sm:$0xff] %v510_v1 }
 0x2de   :  { %563 = vst [vmem:[#allocation2 + $0x8] sm:$0xff] %v512_v0  ;;  %v515_v52 = vpop.f32.mrb[2].mxu1 }
 0x2df   :  { %v516_v53 = vadd.f32 %v515_v52, %v409_v59  ;;  %v517_v55 = vpop.f32.mrb[3].mxu1 }
 0x2e0   :  { %v518_v56 = vadd.f32 %v517_v55, %v413_v48 }
 0x2e1   :  { %564 = vst [vmem:[#allocation2 + $0x10] sm:$0xff] %v516_v53 }
 0x2e2   :  { %565 = vst [vmem:[#allocation2 + $0x18] sm:$0xff] %v518_v56  ;;  %v521_v57 = vpop.f32.mrb[4].mxu1 }
 0x2e3   :  { %v522_v58 = vadd.f32 %v521_v57, %v409_v59  ;;  %v523_v60 = vpop.f32.mrb[5].mxu1 }
 0x2e4   :  { %v524_v61 = vadd.f32 %v523_v60, %v413_v48 }
 0x2e5   :  { %566 = vst [vmem:[#allocation2 + $0x20] sm:$0xff] %v522_v58 }
 0x2e6   :  { %567 = vst [vmem:[#allocation2 + $0x28] sm:$0xff] %v524_v61  ;;  %v527_v62 = vpop.f32.mrb[6].mxu1 }
 0x2e7   :  { %v528_v63 = vadd.f32 %v527_v62, %v409_v59  ;;  %v529_v2 = vpop.f32.mrb[7].mxu1 }
 0x2e8   :  { %v530_v3 = vadd.f32 %v529_v2, %v413_v48 }
 0x2e9   :  { %568 = vst [vmem:[#allocation2 + $0x30] sm:$0xff] %v528_v63 }
 0x2ea   :  { %569 = vst [vmem:[#allocation2 + $0x38] sm:$0xff] %v530_v3  ;;  %v533_v4 = vpop.f32.mrb[8].mxu1 }
 0x2eb   :  { %v534_v5 = vadd.f32 %v533_v4, %v409_v59  ;;  %v535_v6 = vpop.f32.mrb[9].mxu1 }
 0x2ec   :  { %v536_v7 = vadd.f32 %v535_v6, %v413_v48 }
 0x2ed   :  { %570 = vst [vmem:[#allocation2 + $0x40] sm:$0xff] %v534_v5 }
 0x2ee   :  { %571 = vst [vmem:[#allocation2 + $0x48] sm:$0xff] %v536_v7  ;;  %v539_v8 = vpop.f32.mrb[10].mxu1 }
 0x2ef   :  { %v540_v9 = vadd.f32 %v539_v8, %v409_v59  ;;  %v541_v10 = vpop.f32.mrb[11].mxu1 }
 0x2f0   :  { %v542_v11 = vadd.f32 %v541_v10, %v413_v48 }
 0x2f1   :  { %572 = vst [vmem:[#allocation2 + $0x50] sm:$0xff] %v540_v9 }
 0x2f2   :  { %573 = vst [vmem:[#allocation2 + $0x58] sm:$0xff] %v542_v11  ;;  %v545_v25 = vpop.f32.mrb[12].mxu1 }
 0x2f3   :  { %v546_v12 = vadd.f32 %v545_v25, %v409_v59  ;;  %v547_v13 = vpop.f32.mrb[13].mxu1 }
 0x2f4   :  { %v548_v14 = vadd.f32 %v547_v13, %v413_v48 }
 0x2f5   :  { %574 = vst [vmem:[#allocation2 + $0x60] sm:$0xff] %v546_v12 }
 0x2f6   :  { %575 = vst [vmem:[#allocation2 + $0x68] sm:$0xff] %v548_v14  ;;  %v551_v15 = vpop.f32.mrb[14].mxu1 }
 0x2f7   :  { %v552_v16 = vadd.f32 %v551_v15, %v409_v59  ;;  %v553_v17 = vpop.f32.mrb[15].mxu1 }
 0x2f8   :  { %v554_v18 = vadd.f32 %v553_v17, %v413_v48 }
 0x2f9   :  { %576 = vst [vmem:[#allocation2 + $0x70] sm:$0xff] %v552_v16 }
 0x2fa   :  { %577 = vst [vmem:[#allocation2 + $0x78] sm:$0xff] %v554_v18  ;;  %v557_v19 = vpop.f32.mrb[16].mxu1 }
 0x2fb   :  { %v558_v20 = vadd.f32 %v557_v19, %v409_v59  ;;  %v559_v29 = vpop.f32.mrb[17].mxu1 }
 0x2fc   :  { %v560_v21 = vadd.f32 %v559_v29, %v413_v48 }
 0x2fd   :  { %578 = vst [vmem:[#allocation2 + $0x80] sm:$0xff] %v558_v20 }
 0x2fe   :  { %579 = vst [vmem:[#allocation2 + $0x88] sm:$0xff] %v560_v21 }
 0x2ff LB: > { %s2026_s21 = sshll.u32 %s2725_s0, 10  ;;  %s1788_s23 = sshll.u32 %s2725_s0, 3  ;;  %s2725_s0 = sphi %s3037_s0, %s585_s0   ;;  %v2721_v30 = vphi %v3035_v30, %v3390_v30   ;;  %v2717_v28 = vphi %v3033_v28, %v3389_v28   ;;  %v2713_v27 = vphi %v3031_v27, %v3388_v27   ;;  %v2709_v26 = vphi %v3029_v26, %v3387_v26   ;;  %v2705_v34 = vphi %v3027_v34, %v3386_v34   ;;  %v2701_v24 = vphi %v3025_v24, %v3385_v24   ;;  %v2697_v23 = vphi %v3023_v23, %v3384_v23   ;;  %v2693_v22 = vphi %v3021_v22, %v3383_v22  }
 0x300   : > { %s3067_s22 = scalar_lea.vmem [#allocation9], %s2026_s21  ;;  %s596_s25 = sshra.s32 %s1788_s23, 3 }
 0x301   : > { %v2299_v31 = vld [vmem:[%s3067_s22 + $0x4] ss:$8 sps:$4 sm:$0xff]   ;;  %v2303_v33 = vld [vmem:[%s3067_s22] ss:$8 sps:$4 sm:$0xff]   ;;  %v2305_v35 = vld [vmem:[%s3067_s22 + $0x14] ss:$8 sps:$4 sm:$0xff]  }
 0x302   : > { %v2301_v32 = vld [vmem:[%s3067_s22 + $0x104] ss:$8 sps:$4 sm:$0xff]   ;;  %800 = vmatprep.subr.bf16.mxu0 %v2299_v31  ;;  %v2304_v39 = vld [vmem:[%s3067_s22 + $0x100] ss:$8 sps:$4 sm:$0xff]   ;;  %v2307_v36 = vld [vmem:[%s3067_s22 + $0x114] ss:$8 sps:$4 sm:$0xff]  }
 0x303   : > { %1045 = vmatprep.subr.bf16.mxu1 %v2301_v32  ;;  %801 = vmatpush1.bf16.msra.mxu0 %v2303_v33  ;;  %v2309_v37 = vld [vmem:[%s3067_s22 + $0x10] ss:$8 sps:$4 sm:$0xff]   ;;  %v2311_v44 = vld [vmem:[%s3067_s22 + $0x24] ss:$8 sps:$4 sm:$0xff]   ;;  %v2315_v41 = vld [vmem:[%s3067_s22 + $0x20] ss:$8 sps:$4 sm:$0xff]  }
 0x304   : > { %1046 = vmatpush1.bf16.msra.mxu1 %v2304_v39  ;;  %802 = vmatprep.subr.bf16.mxu0 %v2305_v35  ;;  %v2310_v38 = vld [vmem:[%s3067_s22 + $0x110] ss:$8 sps:$4 sm:$0xff]   ;;  %v2313_v40 = vld [vmem:[%s3067_s22 + $0x124] ss:$8 sps:$4 sm:$0xff]   ;;  %v2316_v42 = vld [vmem:[%s3067_s22 + $0x120] ss:$8 sps:$4 sm:$0xff]  }
 0x305   : > { %1047 = vmatprep.subr.bf16.mxu1 %v2307_v36  ;;  %v2317_v49 = vld [vmem:[%s3067_s22 + $0x34] ss:$8 sps:$4 sm:$0xff]   ;;  %v2321_v46 = vld [vmem:[%s3067_s22 + $0x30] ss:$8 sps:$4 sm:$0xff]   ;;  %v2323_v48 = vld [vmem:[%s3067_s22 + $0x44] ss:$8 sps:$4 sm:$0xff]  }
 0x306   : > { %v2319_v43 = vld [vmem:[%s3067_s22 + $0x134] ss:$8 sps:$4 sm:$0xff]   ;;  %v2322_v59 = vld [vmem:[%s3067_s22 + $0x130] ss:$8 sps:$4 sm:$0xff]   ;;  %v2325_v50 = vld [vmem:[%s3067_s22 + $0x144] ss:$8 sps:$4 sm:$0xff]  }
 0x307   : > { %803 = vmatpush1.bf16.msra.mxu0 %v2309_v37  ;;  %v2327_v1 = vld [vmem:[%s3067_s22 + $0x40] ss:$8 sps:$4 sm:$0xff]   ;;  %v2329_v0 = vld [vmem:[%s3067_s22 + $0x54] ss:$8 sps:$4 sm:$0xff]   ;;  %v2333_v53 = vld [vmem:[%s3067_s22 + $0x50] ss:$8 sps:$4 sm:$0xff]  }
 0x308   : > { %1048 = vmatpush1.bf16.msra.mxu1 %v2310_v38  ;;  %804 = vmatprep.subr.bf16.mxu0 %v2311_v44  ;;  %v2328_v51 = vld [vmem:[%s3067_s22 + $0x140] ss:$8 sps:$4 sm:$0xff]   ;;  %v2331_v52 = vld [vmem:[%s3067_s22 + $0x154] ss:$8 sps:$4 sm:$0xff]   ;;  %v2334_v55 = vld [vmem:[%s3067_s22 + $0x150] ss:$8 sps:$4 sm:$0xff]  }
 0x309   : > { %1049 = vmatprep.subr.bf16.mxu1 %v2313_v40  ;;  %v2335_v56 = vld [vmem:[%s3067_s22 + $0x64] ss:$8 sps:$4 sm:$0xff]   ;;  %v2339_v58 = vld [vmem:[%s3067_s22 + $0x60] ss:$8 sps:$4 sm:$0xff]   ;;  %v2341_v61 = vld [vmem:[%s3067_s22 + $0x74] ss:$8 sps:$4 sm:$0xff]  }
 0x30a   : > { %v2337_v57 = vld [vmem:[%s3067_s22 + $0x164] ss:$8 sps:$4 sm:$0xff]   ;;  %v2340_v60 = vld [vmem:[%s3067_s22 + $0x160] ss:$8 sps:$4 sm:$0xff]   ;;  %v2343_v62 = vld [vmem:[%s3067_s22 + $0x174] ss:$8 sps:$4 sm:$0xff]  }
 0x30b   : > { %805 = vmatpush1.bf16.msra.mxu0 %v2315_v41  ;;  %v2345_v63 = vld [vmem:[%s3067_s22 + $0x70] ss:$8 sps:$4 sm:$0xff]   ;;  %v2347_v3 = vld [vmem:[%s3067_s22 + $0x84] ss:$8 sps:$4 sm:$0xff]   ;;  %v2351_v5 = vld [vmem:[%s3067_s22 + $0x80] ss:$8 sps:$4 sm:$0xff]  }
 0x30c   : > { %1050 = vmatpush1.bf16.msra.mxu1 %v2316_v42  ;;  %806 = vmatprep.subr.bf16.mxu0 %v2317_v49  ;;  %v2346_v2 = vld [vmem:[%s3067_s22 + $0x170] ss:$8 sps:$4 sm:$0xff]   ;;  %v2349_v4 = vld [vmem:[%s3067_s22 + $0x184] ss:$8 sps:$4 sm:$0xff]   ;;  %v2352_v6 = vld [vmem:[%s3067_s22 + $0x180] ss:$8 sps:$4 sm:$0xff]  }
 0x30d   : > { %1051 = vmatprep.subr.bf16.mxu1 %v2319_v43  ;;  %v2353_v7 = vld [vmem:[%s3067_s22 + $0x94] ss:$8 sps:$4 sm:$0xff]   ;;  %v2357_v9 = vld [vmem:[%s3067_s22 + $0x90] ss:$8 sps:$4 sm:$0xff]   ;;  %v2359_v11 = vld [vmem:[%s3067_s22 + $0xa4] ss:$8 sps:$4 sm:$0xff]  }
 0x30e   : > { %v2355_v8 = vld [vmem:[%s3067_s22 + $0x194] ss:$8 sps:$4 sm:$0xff]   ;;  %v2358_v10 = vld [vmem:[%s3067_s22 + $0x190] ss:$8 sps:$4 sm:$0xff]   ;;  %s2024_s26 = sshll.u32 %s596_s25, 4  ;;  %s585_s0 = sadd.s32 1, %s2725_s0  }
 0x30f   : > { %807 = vmatpush1.bf16.msra.mxu0 %v2321_v46  ;;  %v2361_v25 = vld [vmem:[%s3067_s22 + $0x1a4] ss:$8 sps:$4 sm:$0xff]   ;;  %v2363_v12 = vld [vmem:[%s3067_s22 + $0xa0] ss:$8 sps:$4 sm:$0xff]   ;;  %v2365_v14 = vld [vmem:[%s3067_s22 + $0xb4] ss:$8 sps:$4 sm:$0xff]  }
 0x310   : > { %1052 = vmatpush1.bf16.msra.mxu1 %v2322_v59  ;;  %808 = vmatprep.subr.bf16.mxu0 %v2323_v48  ;;  %v2364_v13 = vld [vmem:[%s3067_s22 + $0x1a0] ss:$8 sps:$4 sm:$0xff]   ;;  %v2367_v15 = vld [vmem:[%s3067_s22 + $0x1b4] ss:$8 sps:$4 sm:$0xff]   ;;  %s3116_s5 = scalar_lea.vmem [#allocation2], %s2024_s26  ;;  %p582_p6 = scmp.ge.s32.totalorder %s585_s0, 9  }
 0x311   : > { %1053 = vmatprep.subr.bf16.mxu1 %v2325_v50  ;;  %v602_v16 = vld [vmem:[%s3116_s5 + $0x8] sm:$0xff]  ;;  %v2369_v18 = vld [vmem:[%s3067_s22 + $0xb0] ss:$8 sps:$4 sm:$0xff]   ;;  %v2377_v33 = vld [vmem:[%s3067_s22 + $0xd4] ss:$8 sps:$4 sm:$0xff]   ;;  %s2740_s30 = smov (%p582_p6), [#allocation14]  }
 0x312   : > { %v3119_v17 = vpack.c.bf16 %v602_v16, %v602_v16  ;;  %v2370_v19 = vld [vmem:[%s3067_s22 + $0x1b0] ss:$8 sps:$4 sm:$0xff]   ;;  %v2371_v20 = vld [vmem:[%s3067_s22 + $0xc4] ss:$8 sps:$4 sm:$0xff]   ;;  %v2375_v31 = vld [vmem:[%s3067_s22 + $0xc0] ss:$8 sps:$4 sm:$0xff]  }
 0x313   : > { %809 = vmatpush1.bf16.msra.mxu0 %v2327_v1  ;;  %v2373_v29 = vld [vmem:[%s3067_s22 + $0x1c4] ss:$8 sps:$4 sm:$0xff]   ;;  %v2376_v32 = vld [vmem:[%s3067_s22 + $0x1c0] ss:$8 sps:$4 sm:$0xff]   ;;  %v2379_v39 = vld [vmem:[%s3067_s22 + $0x1d4] ss:$8 sps:$4 sm:$0xff]  }
 0x314   : > { %1054 = vmatpush1.bf16.msra.mxu1 %v2328_v51  ;;  %810 = vmatprep.subr.bf16.mxu0 %v2329_v0  ;;  %v882_v21 = vrot.slane %v3119_v17, 1  ;;  %v2381_v35 = vld [vmem:[%s3067_s22 + $0xd0] ss:$8 sps:$4 sm:$0xff]   ;;  %v2383_v37 = vld [vmem:[%s3067_s22 + $0xe4] ss:$8 sps:$4 sm:$0xff]   ;;  %s1711_s11 = sshll.u32 (%p582_p6), %s2740_s30, 4  ;;  %s1712_s11 = int_to_ptr.vmem [resolvable:$true] %s1711_s11 }
 0x315   : > { %1055 = vmatprep.subr.bf16.mxu1 %v2331_v52  ;;  %832 = vmatprep.mubr.bf16.mxu0 %v3119_v17  ;;  %v2382_v36 = vld [vmem:[%s3067_s22 + $0x1d0] ss:$8 sps:$4 sm:$0xff]   ;;  %v2385_v38 = vld [vmem:[%s3067_s22 + $0x1e4] ss:$8 sps:$4 sm:$0xff]   ;;  %v2387_v44 = vld [vmem:[%s3067_s22 + $0xe0] ss:$8 sps:$4 sm:$0xff]   ;;  %p2628_p8 = scmp.lt.s32.totalorder (%p582_p6), %s1712_s11, %s1712_s11 }
 0x316   : > { %1077 = vmatprep.mubr.bf16.mxu1 %v882_v21  ;;  %v2388_v40 = vld [vmem:[%s3067_s22 + $0x1e0] ss:$8 sps:$4 sm:$0xff]   ;;  %v2389_v42 = vld [vmem:[%s3067_s22 + $0xf4] ss:$8 sps:$4 sm:$0xff]   ;;  %v2393_v46 = vld [vmem:[%s3067_s22 + $0xf0] ss:$8 sps:$4 sm:$0xff]  }
 0x317   : > { %811 = vmatpush1.bf16.msra.mxu0 %v2333_v53  ;;  %v601_v41 = vld [vmem:[%s3116_s5] sm:$0xff]  ;;  %v2391_v49 = vld [vmem:[%s3067_s22 + $0x1f4] ss:$8 sps:$4 sm:$0xff]   ;;  %v2394_v59 = vld [vmem:[%s3067_s22 + $0x1f0] ss:$8 sps:$4 sm:$0xff]   ;;  %vm1703_vm2 = vcmask (%p582_p6), 123904  }
 0x318   : > { %1056 = vmatpush1.bf16.msra.mxu1 %v2334_v55  ;;  %812 = vmatprep.subr.bf16.mxu0 %v2335_v56  ;;  %v3140_v43 = vpack.c.bf16 %v601_v41, %v601_v41  ;;  %v2397_v48 = vld [vmem:[%s3067_s22 + $0x204] ss:$8 sps:$4 sm:$0xff]   ;;  %v2395_v51 = vld [vmem:[%s3067_s22 + $0x200] ss:$8 sps:$4 sm:$0xff]   ;;  %v2403_v52 = vld [vmem:[%s3067_s22 + $0x214] ss:$8 sps:$4 sm:$0xff]  }
 0x319   : > { %1057 = vmatprep.subr.bf16.mxu1 %v2337_v57  ;;  %v2400_v50 = vld [vmem:[%s3067_s22 + $0x304] ss:$8 sps:$4 sm:$0xff]   ;;  %v2398_v0 = vld [vmem:[%s3067_s22 + $0x300] ss:$8 sps:$4 sm:$0xff]   ;;  %v2406_v53 = vld [vmem:[%s3067_s22 + $0x314] ss:$8 sps:$4 sm:$0xff]  }
 0x31a   : > { %v881_v1 = vrot.slane %v3140_v43, 1  ;;  %v1125_v55 = vrot.slane %v3119_v17, 2  ;;  %v1368_v56 = vrot.slane %v3119_v17, 3  ;;  %v2401_v57 = vld [vmem:[%s3067_s22 + $0x210] ss:$8 sps:$4 sm:$0xff]  }
 0x31b   : > { %813 = vmatpush1.bf16.msra.mxu0 %v2339_v58  ;;  %v2404_v58 = vld [vmem:[%s3067_s22 + $0x310] ss:$8 sps:$4 sm:$0xff]   ;;  %v2434_v16 = vld [vmem:[%s3067_s22 + $0x360] ss:$8 sps:$4 sm:$0xff]   ;;  %v2439_v17 = vld [vmem:[%s3067_s22 + $0x274] ss:$8 sps:$4 sm:$0xff]  }
 0x31c   : > { %1058 = vmatpush1.bf16.msra.mxu1 %v2340_v60  ;;  %814 = vmatprep.subr.bf16.mxu0 %v2341_v61  ;;  %v2409_v60 = vld [vmem:[%s3067_s22 + $0x224] ss:$8 sps:$4 sm:$0xff]   ;;  %v2463_v41 = vld [vmem:[%s3067_s22 + $0x2b4] ss:$8 sps:$4 sm:$0xff]  }
 0x31d   : > { %1059 = vmatprep.subr.bf16.mxu1 %v2343_v62  ;;  %v2412_v61 = vld [vmem:[%s3067_s22 + $0x324] ss:$8 sps:$4 sm:$0xff]   ;;  %v2407_v62 = vld [vmem:[%s3067_s22 + $0x220] ss:$8 sps:$4 sm:$0xff]  }
 0x31e   : > { %v2448_v21 = vld [vmem:[%s3067_s22 + $0x384] ss:$8 sps:$4 sm:$0xff]  }
 0x31f   : > { %815 = vmatpush1.bf16.msra.mxu0 %v2345_v63  ;;  %v2410_v63 = vld [vmem:[%s3067_s22 + $0x320] ss:$8 sps:$4 sm:$0xff]  }
 0x320   : > { %1060 = vmatpush1.bf16.msra.mxu1 %v2346_v2  ;;  %816 = vmatprep.subr.bf16.mxu0 %v2347_v3  ;;  %v2415_v2 = vld [vmem:[%s3067_s22 + $0x234] ss:$8 sps:$4 sm:$0xff]  }
 0x321   : > { %1061 = vmatprep.subr.bf16.mxu1 %v2349_v4  ;;  %v2418_v3 = vld [vmem:[%s3067_s22 + $0x334] ss:$8 sps:$4 sm:$0xff]   ;;  %v2413_v4 = vld [vmem:[%s3067_s22 + $0x230] ss:$8 sps:$4 sm:$0xff]  }
 0x323   : > { %817 = vmatpush1.bf16.msra.mxu0 %v2351_v5  ;;  %v2416_v5 = vld [vmem:[%s3067_s22 + $0x330] ss:$8 sps:$4 sm:$0xff]  }
 0x324   : > { %1062 = vmatpush1.bf16.msra.mxu1 %v2352_v6  ;;  %818 = vmatprep.subr.bf16.mxu0 %v2353_v7  ;;  %v2421_v6 = vld [vmem:[%s3067_s22 + $0x244] ss:$8 sps:$4 sm:$0xff]  }
 0x325   : > { %1063 = vmatprep.subr.bf16.mxu1 %v2355_v8  ;;  %v2424_v7 = vld [vmem:[%s3067_s22 + $0x344] ss:$8 sps:$4 sm:$0xff]   ;;  %v2419_v8 = vld [vmem:[%s3067_s22 + $0x240] ss:$8 sps:$4 sm:$0xff]  }
 0x327   : > { %819 = vmatpush1.bf16.msra.mxu0 %v2357_v9  ;;  %v2422_v9 = vld [vmem:[%s3067_s22 + $0x340] ss:$8 sps:$4 sm:$0xff]  }
 0x328   : > { %1064 = vmatpush1.bf16.msra.mxu1 %v2358_v10  ;;  %820 = vmatprep.subr.bf16.mxu0 %v2359_v11  ;;  %v2427_v10 = vld [vmem:[%s3067_s22 + $0x254] ss:$8 sps:$4 sm:$0xff]  }
 0x329   : > { %1065 = vmatprep.subr.bf16.mxu1 %v2361_v25  ;;  %v2430_v11 = vld [vmem:[%s3067_s22 + $0x354] ss:$8 sps:$4 sm:$0xff]   ;;  %v2425_v25 = vld [vmem:[%s3067_s22 + $0x250] ss:$8 sps:$4 sm:$0xff]  }
 0x32b   : > { %821 = vmatpush1.bf16.msra.mxu0 %v2363_v12  ;;  %v2428_v12 = vld [vmem:[%s3067_s22 + $0x350] ss:$8 sps:$4 sm:$0xff]  }
 0x32c   : > { %1066 = vmatpush1.bf16.msra.mxu1 %v2364_v13  ;;  %822 = vmatprep.subr.bf16.mxu0 %v2365_v14  ;;  %v2433_v13 = vld [vmem:[%s3067_s22 + $0x264] ss:$8 sps:$4 sm:$0xff]  }
 0x32d   : > { %1067 = vmatprep.subr.bf16.mxu1 %v2367_v15  ;;  %v2436_v14 = vld [vmem:[%s3067_s22 + $0x364] ss:$8 sps:$4 sm:$0xff]   ;;  %v2431_v15 = vld [vmem:[%s3067_s22 + $0x260] ss:$8 sps:$4 sm:$0xff]  }
 0x32f   : > { %823 = vmatpush1.bf16.msra.mxu0 %v2369_v18  ;;  %v2442_v18 = vld [vmem:[%s3067_s22 + $0x374] ss:$8 sps:$4 sm:$0xff]  }
 0x330   : > { %1068 = vmatpush1.bf16.msra.mxu1 %v2370_v19  ;;  %824 = vmatprep.subr.bf16.mxu0 %v2371_v20  ;;  %v2437_v19 = vld [vmem:[%s3067_s22 + $0x270] ss:$8 sps:$4 sm:$0xff]  }
 0x331   : > { %1069 = vmatprep.subr.bf16.mxu1 %v2373_v29  ;;  %v2440_v20 = vld [vmem:[%s3067_s22 + $0x370] ss:$8 sps:$4 sm:$0xff]   ;;  %v2445_v29 = vld [vmem:[%s3067_s22 + $0x284] ss:$8 sps:$4 sm:$0xff]  }
 0x333   : > { %825 = vmatpush1.bf16.msra.mxu0 %v2375_v31  ;;  %v2443_v31 = vld [vmem:[%s3067_s22 + $0x280] ss:$8 sps:$4 sm:$0xff]  }
 0x334   : > { %1070 = vmatpush1.bf16.msra.mxu1 %v2376_v32  ;;  %826 = vmatprep.subr.bf16.mxu0 %v2377_v33  ;;  %v2446_v32 = vld [vmem:[%s3067_s22 + $0x380] ss:$8 sps:$4 sm:$0xff]   ;;  %v2451_v33 = vld [vmem:[%s3067_s22 + $0x294] ss:$8 sps:$4 sm:$0xff]  }
 0x335   : > { %1071 = vmatprep.subr.bf16.mxu1 %v2379_v39  ;;  %v2454_v39 = vld [vmem:[%s3067_s22 + $0x394] ss:$8 sps:$4 sm:$0xff]  }
 0x337   : > { %827 = vmatpush1.bf16.msra.mxu0 %v2381_v35  ;;  %v2449_v35 = vld [vmem:[%s3067_s22 + $0x290] ss:$8 sps:$4 sm:$0xff]  }
 0x338   : > { %1072 = vmatpush1.bf16.msra.mxu1 %v2382_v36  ;;  %828 = vmatprep.subr.bf16.mxu0 %v2383_v37  ;;  %v2452_v36 = vld [vmem:[%s3067_s22 + $0x390] ss:$8 sps:$4 sm:$0xff]   ;;  %v2457_v37 = vld [vmem:[%s3067_s22 + $0x2a4] ss:$8 sps:$4 sm:$0xff]  }
 0x339   : > { %1073 = vmatprep.subr.bf16.mxu1 %v2385_v38  ;;  %v2460_v38 = vld [vmem:[%s3067_s22 + $0x3a4] ss:$8 sps:$4 sm:$0xff]  }
 0x33b   : > { %829 = vmatpush1.bf16.msra.mxu0 %v2387_v44  ;;  %v2455_v44 = vld [vmem:[%s3067_s22 + $0x2a0] ss:$8 sps:$4 sm:$0xff]  }
 0x33c   : > { %1074 = vmatpush1.bf16.msra.mxu1 %v2388_v40  ;;  %830 = vmatprep.subr.bf16.mxu0 %v2389_v42  ;;  %v2458_v40 = vld [vmem:[%s3067_s22 + $0x3a0] ss:$8 sps:$4 sm:$0xff]   ;;  %v2466_v42 = vld [vmem:[%s3067_s22 + $0x3b4] ss:$8 sps:$4 sm:$0xff]  }
 0x33d   : > { %1075 = vmatprep.subr.bf16.mxu1 %v2391_v49  ;;  %v2461_v49 = vld [vmem:[%s3067_s22 + $0x2b0] ss:$8 sps:$4 sm:$0xff]  }
 0x33f   : > { %831 = vmatpush1.bf16.msra.mxu0 %v2393_v46  ;;  %v2464_v46 = vld [vmem:[%s3067_s22 + $0x3b0] ss:$8 sps:$4 sm:$0xff]  }
 0x340   : > { %1076 = vmatpush1.bf16.msra.mxu1 %v2394_v59  ;;  %1288 = vmatprep.subr.bf16.mxu0 %v2397_v48  ;;  %v2469_v59 = vld [vmem:[%s3067_s22 + $0x2c4] ss:$8 sps:$4 sm:$0xff]  }
 0x341   : > { %1531 = vmatprep.subr.bf16.mxu1 %v2400_v50  ;;  %v2472_v48 = vld [vmem:[%s3067_s22 + $0x3c4] ss:$8 sps:$4 sm:$0xff]   ;;  %v2467_v50 = vld [vmem:[%s3067_s22 + $0x2c0] ss:$8 sps:$4 sm:$0xff]  }
 0x342   : > { %833 = vmatmul.mubr.bf16.vlgmr.msra.gmra.mrb[0].mxu0 %v3140_v43 }
 0x343   : > { %1078 = vmatmul.mubr.bf16.vlgmr.msra.gmra.mrb[0].mxu1 %v881_v1  ;;  %1289 = vmatpush1.bf16.msra.mxu0 %v2395_v51  ;;  %v2470_v1 = vld [vmem:[%s3067_s22 + $0x3c0] ss:$8 sps:$4 sm:$0xff]   ;;  %v2475_v51 = vld [vmem:[%s3067_s22 + $0x2d4] ss:$8 sps:$4 sm:$0xff]  }
 0x344   : > { %1532 = vmatpush1.bf16.msra.mxu1 %v2398_v0  ;;  %1290 = vmatprep.subr.bf16.mxu0 %v2403_v52  ;;  %v2478_v0 = vld [vmem:[%s3067_s22 + $0x3d4] ss:$8 sps:$4 sm:$0xff]   ;;  %v2473_v52 = vld [vmem:[%s3067_s22 + $0x2d0] ss:$8 sps:$4 sm:$0xff]  }
 0x345   : > { %1533 = vmatprep.subr.bf16.mxu1 %v2406_v53  ;;  %1320 = vmatprep.mubr.bf16.mxu0 %v1125_v55  ;;  %v2476_v53 = vld [vmem:[%s3067_s22 + $0x3d0] ss:$8 sps:$4 sm:$0xff]   ;;  %v2481_v55 = vld [vmem:[%s3067_s22 + $0x2e4] ss:$8 sps:$4 sm:$0xff]  }
 0x346   : > { %1563 = vmatprep.mubr.bf16.mxu1 %v1368_v56  ;;  %v2484_v56 = vld [vmem:[%s3067_s22 + $0x3e4] ss:$8 sps:$4 sm:$0xff]  }
 0x347   : > { %1291 = vmatpush1.bf16.msra.mxu0 %v2401_v57  ;;  %v2479_v57 = vld [vmem:[%s3067_s22 + $0x2e0] ss:$8 sps:$4 sm:$0xff]  }
 0x348   : > { %1534 = vmatpush1.bf16.msra.mxu1 %v2404_v58  ;;  %1292 = vmatprep.subr.bf16.mxu0 %v2409_v60  ;;  %v2482_v58 = vld [vmem:[%s3067_s22 + $0x3e0] ss:$8 sps:$4 sm:$0xff]   ;;  %v2487_v60 = vld [vmem:[%s3067_s22 + $0x2f4] ss:$8 sps:$4 sm:$0xff]  }
 0x349   : > { %1535 = vmatprep.subr.bf16.mxu1 %v2412_v61  ;;  %v2490_v61 = vld [vmem:[%s3067_s22 + $0x3f4] ss:$8 sps:$4 sm:$0xff]  }
 0x34b   : > { %1293 = vmatpush1.bf16.msra.mxu0 %v2407_v62  ;;  %v2485_v62 = vld [vmem:[%s3067_s22 + $0x2f0] ss:$8 sps:$4 sm:$0xff]  }
 0x34c   : > { %1536 = vmatpush1.bf16.msra.mxu1 %v2410_v63  ;;  %1294 = vmatprep.subr.bf16.mxu0 %v2415_v2  ;;  %v2488_v63 = vld [vmem:[%s3067_s22 + $0x3f0] ss:$8 sps:$4 sm:$0xff]   ;;  %v1124_v2 = vrot.slane %v3140_v43, 2 }
 0x34d   : > { %1537 = vmatprep.subr.bf16.mxu1 %v2418_v3  ;;  %v1367_v3 = vrot.slane %v3140_v43, 3 }
 0x34f   : > { %1295 = vmatpush1.bf16.msra.mxu0 %v2413_v4 }
 0x350   : > { %1538 = vmatpush1.bf16.msra.mxu1 %v2416_v5  ;;  %1296 = vmatprep.subr.bf16.mxu0 %v2421_v6 }
 0x351   : > { %1539 = vmatprep.subr.bf16.mxu1 %v2424_v7 }
 0x353   : > { %1297 = vmatpush1.bf16.msra.mxu0 %v2419_v8 }
 0x354   : > { %1540 = vmatpush1.bf16.msra.mxu1 %v2422_v9  ;;  %1298 = vmatprep.subr.bf16.mxu0 %v2427_v10 }
 0x355   : > { %1541 = vmatprep.subr.bf16.mxu1 %v2430_v11 }
 0x357   : > { %1299 = vmatpush1.bf16.msra.mxu0 %v2425_v25 }
 0x358   : > { %1542 = vmatpush1.bf16.msra.mxu1 %v2428_v12  ;;  %1300 = vmatprep.subr.bf16.mxu0 %v2433_v13 }
 0x359   : > { %1543 = vmatprep.subr.bf16.mxu1 %v2436_v14 }
 0x35b   : > { %1301 = vmatpush1.bf16.msra.mxu0 %v2431_v15 }
 0x35c   : > { %1544 = vmatpush1.bf16.msra.mxu1 %v2434_v16  ;;  %1302 = vmatprep.subr.bf16.mxu0 %v2439_v17 }
 0x35d   : > { %1545 = vmatprep.subr.bf16.mxu1 %v2442_v18 }
 0x35f   : > { %1303 = vmatpush1.bf16.msra.mxu0 %v2437_v19 }
 0x360   : > { %1546 = vmatpush1.bf16.msra.mxu1 %v2440_v20  ;;  %1304 = vmatprep.subr.bf16.mxu0 %v2445_v29 }
 0x361   : > { %1547 = vmatprep.subr.bf16.mxu1 %v2448_v21  ;;  %v1610_v21 = vld [vmem:[%s3376_s7 + $0x80] sm:$0xff] (%p582_p6) }
 0x363   : > { %1305 = vmatpush1.bf16.msra.mxu0 %v2443_v31  ;;  %v1611_v31 = vld [vmem:[%s3376_s7 + $0x88] sm:$0xff] (%p582_p6) }
 0x364   : > { %1548 = vmatpush1.bf16.msra.mxu1 %v2446_v32  ;;  %1306 = vmatprep.subr.bf16.mxu0 %v2451_v33  ;;  %v1594_v32 = vld [vmem:[%s3376_s7] sm:$0xff] (%p582_p6)  ;;  %v2145_v33 = vpack.c.bf16 (%p582_p6), %v1611_v31, %v1610_v21  ;;  %v2023_v21 = vld [vmem:[#allocation12] ss:$0 sm:$0xff] (%p582_p6) }
 0x365   : > { %1549 = vmatprep.subr.bf16.mxu1 %v2454_v39  ;;  %v1595_v39 = vld [vmem:[%s3376_s7 + $0x8] sm:$0xff] (%p582_p6) }
 0x367   : > { %1307 = vmatpush1.bf16.msra.mxu0 %v2449_v35 }
 0x368   : > { %1550 = vmatpush1.bf16.msra.mxu1 %v2452_v36  ;;  %1308 = vmatprep.subr.bf16.mxu0 %v2457_v37  ;;  %v1596_v36 = vld [vmem:[%s3376_s7 + $0x10] sm:$0xff] (%p582_p6)  ;;  %v1597_v37 = vld [vmem:[%s3376_s7 + $0x18] sm:$0xff] (%p582_p6) }
 0x369   : > { %1551 = vmatprep.subr.bf16.mxu1 %v2460_v38  ;;  %v1614_v38 = vld [vmem:[%s3376_s7 + $0xa0] sm:$0xff] (%p582_p6) }
 0x36b   : > { %1309 = vmatpush1.bf16.msra.mxu0 %v2455_v44  ;;  %v1615_v44 = vld [vmem:[%s3376_s7 + $0xa8] sm:$0xff] (%p582_p6) }
 0x36c   : > { %1552 = vmatpush1.bf16.msra.mxu1 %v2458_v40  ;;  %1310 = vmatprep.subr.bf16.mxu0 %v2463_v41  ;;  %v2151_v40 = vpack.c.bf16 (%p582_p6), %v1597_v37, %v1596_v36  ;;  %v2153_v41 = vpack.c.bf16 (%p582_p6), %v1615_v44, %v1614_v38 }
 0x36d   : > { %1553 = vmatprep.subr.bf16.mxu1 %v2466_v42  ;;  %v1598_v42 = vld [vmem:[%s3376_s7 + $0x20] sm:$0xff] (%p582_p6) }
 0x36f   : > { %1311 = vmatpush1.bf16.msra.mxu0 %v2461_v49  ;;  %v1599_v49 = vld [vmem:[%s3376_s7 + $0x28] sm:$0xff] (%p582_p6) }
 0x370   : > { %1554 = vmatpush1.bf16.msra.mxu1 %v2464_v46  ;;  %1312 = vmatprep.subr.bf16.mxu0 %v2469_v59  ;;  %v1616_v59 = vld [vmem:[%s3376_s7 + $0xb0] sm:$0xff] (%p582_p6) }
 0x371   : > { %1555 = vmatprep.subr.bf16.mxu1 %v2472_v48  ;;  %v1617_v48 = vld [vmem:[%s3376_s7 + $0xb8] sm:$0xff] (%p582_p6) }
 0x373   : > { %1313 = vmatpush1.bf16.msra.mxu0 %v2467_v50  ;;  %v2155_v50 = vpack.c.bf16 (%p582_p6), %v1599_v49, %v1598_v42 }
 0x374   : > { %1556 = vmatpush1.bf16.msra.mxu1 %v2470_v1  ;;  %1314 = vmatprep.subr.bf16.mxu0 %v2475_v51  ;;  %v2157_v1 = vpack.c.bf16 (%p582_p6), %v1617_v48, %v1616_v59  ;;  %v1600_v51 = vld [vmem:[%s3376_s7 + $0x30] sm:$0xff] (%p582_p6) }
 0x375   : > { %1557 = vmatprep.subr.bf16.mxu1 %v2478_v0  ;;  %v1601_v0 = vld [vmem:[%s3376_s7 + $0x38] sm:$0xff] (%p582_p6) }
 0x377   : > { %1315 = vmatpush1.bf16.msra.mxu0 %v2473_v52 }
 0x378   : > { %1558 = vmatpush1.bf16.msra.mxu1 %v2476_v53  ;;  %1316 = vmatprep.subr.bf16.mxu0 %v2481_v55  ;;  %v1618_v53 = vld [vmem:[%s3376_s7 + $0xc0] sm:$0xff] (%p582_p6)  ;;  %v1619_v55 = vld [vmem:[%s3376_s7 + $0xc8] sm:$0xff] (%p582_p6) }
 0x379   : > { %1559 = vmatprep.subr.bf16.mxu1 %v2484_v56  ;;  %v1580_v56 = vld [vmem:[#allocation11] sm:$0x3] (%p582_p6) }
 0x37b   : > { %1317 = vmatpush1.bf16.msra.mxu0 %v2479_v57  ;;  %v1589_v57 = vrot.slane (%p582_p6), %v1580_v56, %v412_v47  ;;  %v1621_v47 = vld [vmem:[%s3376_s7 + $0xd8] sm:$0xff] (%p582_p6) }
 0x37c   : > { %1560 = vmatpush1.bf16.msra.mxu1 %v2482_v58  ;;  %1318 = vmatprep.subr.bf16.mxu0 %v2487_v60  ;;  %v2159_v58 = vpack.c.bf16 (%p582_p6), %v1601_v0, %v1600_v51  ;;  %v2161_v60 = vpack.c.bf16 (%p582_p6), %v1619_v55, %v1618_v53 }
 0x37d   : > { %1561 = vmatprep.subr.bf16.mxu1 %v2490_v61  ;;  %v1602_v61 = vld [vmem:[%s3376_s7 + $0x40] sm:$0xff] (%p582_p6) }
 0x37f   : > { %1319 = vmatpush1.bf16.msra.mxu0 %v2485_v62  ;;  %v1603_v62 = vld [vmem:[%s3376_s7 + $0x48] sm:$0xff] (%p582_p6) }
 0x380   : > { %1562 = vmatpush1.bf16.msra.mxu1 %v2488_v63  ;;  %2146 = vmatprep.subr.bf16.mxu0 (%p582_p6), %v2145_v33 }
 0x382   : > { %1321 = vmatmul.mubr.bf16.vlgmr.msra.gmra.mrb[4].mxu0 %v1124_v2  ;;  %v1620_v2 = vld [vmem:[%s3376_s7 + $0xd0] sm:$0xff] (%p582_p6) }
 0x383   : > { %1564 = vmatmul.mubr.bf16.vlgmr.msra.gmra.mrb[4].mxu1 %v1367_v3  ;;  %v2163_v3 = vpack.c.bf16 (%p582_p6), %v1603_v62, %v1602_v61 }
 0x415   : > { %v834_v4 = vpop.f32.mrb[0].mxu0 }
 0x416   : > { %v1079_v5 = vpop.f32.mrb[0].mxu1  ;;  %v3215_v30 = vadd.f32 %v2721_v30, %v834_v4   ;;  %v836_v8 = vpop.f32.mrb[1].mxu0  ;;  %v2165_v4 = vpack.c.bf16 (%p582_p6), %v1621_v47, %v1620_v2 }
 0x417   : > { %v3218_v27 = vadd.f32 %v2713_v27, %v1079_v5   ;;  %v1081_v9 = vpop.f32.mrb[1].mxu1  ;;  %v842_v10 = vadd.f32 %v2717_v28, %v836_v8   ;;  %v838_v25 = vpop.f32.mrb[2].mxu0  ;;  %v1604_v5 = vld [vmem:[%s3376_s7 + $0x50] sm:$0xff] (%p582_p6)  ;;  %v1605_v8 = vld [vmem:[%s3376_s7 + $0x58] sm:$0xff] (%p582_p6) }
 0x418   : > { %v3379_v6 = vmov %v3215_v30  ;;  %v1087_v11 = vadd.f32 %v2709_v26, %v1081_v9   ;;  %v1083_v43 = vpop.f32.mrb[2].mxu1  ;;  %v839_v12 = vpop.f32.mrb[3].mxu0  ;;  %v1622_v9 = vld [vmem:[%s3376_s7 + $0xe0] sm:$0xff] (%p582_p6)  ;;  %v2167_v25 = vpack.c.bf16 (%p582_p6), %v1605_v8, %v1604_v5 }
 0x419   : > { %v3380_v7 = vmov %v3218_v27  ;;  %v1084_v13 = vpop.f32.mrb[3].mxu1  ;;  %v1606_v12 = vld [vmem:[%s3376_s7 + $0x60] sm:$0xff] (%p582_p6) }
 0x41a   :  { %v1607_v13 = vld [vmem:[%s3376_s7 + $0x68] sm:$0xff] (%p582_p6) }
 0x454   :  { %584 = sbr.rel (!%p582_p6) target bundleno = 767 (0x2ff), region = 92 }
 0x455   : > { %v1322_v14 = vpop.f32.mrb[4].mxu0 }
 0x456   : > { %v1565_v15 = vpop.f32.mrb[4].mxu1  ;;  %v3223_v34 = vadd.f32 %v2705_v34, %v1322_v14   ;;  %v1324_v30 = vpop.f32.mrb[5].mxu0  ;;  %v1624_v14 = vld [vmem:[%s3376_s7 + $0xf0] sm:$0xff] (%p582_p6) }
 0x457   : > { %v3226_v23 = vadd.f32 %v2697_v23, %v1565_v15   ;;  %v1567_v27 = vpop.f32.mrb[5].mxu1  ;;  %v1330_v18 = vadd.f32 %v2701_v24, %v1324_v30   ;;  %v1326_v28 = vpop.f32.mrb[6].mxu0  ;;  %v3390_v30 = vmov %v3379_v6  ;;  %v2171_v15 = vpack.c.bf16 (%p582_p6), %v1607_v13, %v1606_v12 }
 0x458   : > { %v3381_v16 = vmov %v3223_v34  ;;  %v1573_v19 = vadd.f32 %v2693_v22, %v1567_v27   ;;  %v1569_v26 = vpop.f32.mrb[6].mxu1  ;;  %v1327_v20 = vpop.f32.mrb[7].mxu0  ;;  %v3388_v27 = vmov %v3380_v7  ;;  %v3389_v28 = vmov %v842_v10 }
 0x459   : > { %v3382_v17 = vmov %v3226_v23  ;;  %v1570_v29 = vpop.f32.mrb[7].mxu1  ;;  %v3385_v24 = vmov %v1330_v18  ;;  %v3386_v34 = vmov %v3381_v16  ;;  %v3387_v26 = vmov %v1087_v11  ;;  %v1608_v27 = vld [vmem:[%s3376_s7 + $0x70] sm:$0xff] (%p582_p6) }
 0x45a   : > { %v3383_v22 = vmov %v1573_v19  ;;  %v3384_v23 = vmov %v3382_v17  ;;  %v1575_v24 = vadd.f32 (%p582_p6), %v1087_v11, %v842_v10  ;;  %v2147_v34 = vpack.c.bf16 (%p582_p6), %v1595_v39, %v1594_v32  ;;  %v1623_v10 = vld [vmem:[%s3376_s7 + $0xe8] sm:$0xff] (%p582_p6) }
 0x45b   :  { %v1612_v22 = vld [vmem:[%s3376_s7 + $0x90] sm:$0xff]  ;;  %v1613_v23 = vld [vmem:[%s3376_s7 + $0x98] sm:$0xff]  ;;  %v1574_v11 = vadd.f32 %v3380_v7, %v3379_v6  ;;  %v2169_v43 = vpack.c.bf16 %v1623_v10, %v1622_v9 }
 0x45c   :  { %v2149_v35 = vpack.c.bf16 %v1613_v23, %v1612_v22  ;;  %2148 = vmatpush3.bf16.msra.mxu0 %v2147_v34  ;;  %v1577_v46 = vadd.f32 %v1575_v24, %v1330_v18  ;;  %v1625_v6 = vld [vmem:[%s3376_s7 + $0xf8] sm:$0xff] }
 0x45d   :  { %v1576_v7 = vadd.f32 %v1574_v11, %v3381_v16  ;;  %v2173_v30 = vpack.c.bf16 %v1625_v6, %v1624_v14  ;;  %v1609_v18 = vld [vmem:[%s3376_s7 + $0x78] sm:$0xff]  ;;  %s2623_s7 = scalar_lea.vmem %s1712_s11, 32 }
 0x45e   :  { %2150 = vmatprep.subr.bf16.mxu0 %v2149_v35  ;;  %v1579_v52 = vadd.f32 %v1577_v46, %v1573_v19  ;;  %v1585_v19 = vrot.slane %v1580_v56, %v408_v54  ;;  %v2175_v26 = vpack.c.bf16 %v1609_v18, %v1608_v27  ;;  %p2624_p7 = scmp.ne.s32.totalorder %s1712_s11, %s2623_s7  ;;  %p2629_p9 = scmp.lt.s32.totalorder %s2623_s7, %s2623_s7 }
 0x45f   :  { %v1578_v28 = vadd.f32 %v1576_v7, %v3382_v17 }
 0x460   :  { %2152 = vmatpush3.bf16.msra.mxu0 %v2151_v40  ;;  %v1593_v63 = vadd.f32 %v1589_v57, %v1579_v52  ;;  %p2630_p10 = por %p2629_p9, %p2628_p8 }
 0x461   :  { %2154 = vmatprep.subr.bf16.mxu0 %v2153_v41  ;;  %v1592_v16 = vadd.f32 %v1585_v19, %v1578_v28 }
 0x462   :  { %1697 = vmatprep.mubr.f32.mxu0 %v1593_v63  ;;  %p2631_p11 = pnand %p2630_p10, %p2624_p7 }
 0x464   :  { %2156 = vmatpush3.bf16.msra.mxu0 %v2155_v50 }
 0x465   :  { %2158 = vmatprep.subr.bf16.mxu0 %v2157_v1 }
 0x468   :  { %2160 = vmatpush3.bf16.msra.mxu0 %v2159_v58 }
 0x469   :  { %2162 = vmatprep.subr.bf16.mxu0 %v2161_v60 }
 0x46c   :  { %2164 = vmatpush3.bf16.msra.mxu0 %v2163_v3 }
 0x46d   :  { %2166 = vmatprep.subr.bf16.mxu0 %v2165_v4 }
 0x470   :  { %2168 = vmatpush3.bf16.msra.mxu0 %v2167_v25 }
 0x471   :  { %2170 = vmatprep.subr.bf16.mxu0 %v2169_v43 }
 0x474   :  { %2172 = vmatpush3.bf16.msra.mxu0 %v2171_v15 }
 0x475   :  { %2174 = vmatprep.subr.bf16.mxu0 %v2173_v30 }
 0x478   :  { %2176 = vmatpush3.bf16.msra.mxu0 %v2175_v26 }
 0x47b   :  { %1698 = vmatmul.mubr.f32.vlgmr.msra.gmra.mrb[0].mxu0 %v1592_v16 }
 0x54e   :  { %v2079_v20 = vpop.f32.mrb[0].mxu0 }
 0x54f   :  { %v2080_v29 = vpop.f32.mrb[1].mxu0 }
 0x550   :  { %v2081_v31 = vadd.f32 %v2080_v29, %v2079_v20 }
 0x552   :  { %v1700_v32 = vadd.f32 %v2081_v31, %v2023_v21 }
 0x554   :  { %1704 = vst.msk [vmem:[#allocation14] sm:$0x3] %vm1703_vm2, %v1700_v32 }
 0x555   :  { %2634 = shalt.err (!%p2631_p11)
}
 0x556   :  { %s2635_s3 = scalar_lea.hbm %s3378_s9, 32 }
 0x557   :  { %p2636_p12 = scmp.ne.s32.totalorder %s3378_s9, %s2635_s3  ;;  %p2639_p13 = scmp.lt.u32.totalorder %s2635_s3, %s3378_s9 }
 0x559   :  { %p2641_p0 = pnand %p2639_p13, %p2636_p12 }
 0x55b   :  { %2644 = shalt.err (!%p2641_p0)
}
 0x55c   :  { %1714 = dma.vmem_to_hbm [thread:$0]  %s1712_s11, 32, %s3378_s9, [#allocation5]  }
 0x55d   :  { %2689 = dma.done.wait [#allocation5], 32  }
 0x55e   :  { %2690 = vsyncadd [#allocation5], 4294967264 }
 0x55f   :  { %1718 = vsyncpa [#allocation4], 1 }
 0x560   :  { %1719 = vsyncpa [#allocation7], 1 }
 0x561   :  { %1720 = vsyncpa [#allocation10], 1 }
 0x562   :  { %1721 = vsyncpa [#allocation13], 1 }
 0x563   :  { %1722 = vsyncpa [#allocation5], 1 }

</bundles_post_ra>
